<compile_context>
chip_gen: v7x
topology: tpu7x:2x2x1
jax: 0.10.0
libtpu: 0.0.40
codegen_flags: <defaults>
</compile_context>

<pallas_src>
import functools

import jax
import jax.numpy as jnp
from jax.experimental import pallas as pl
from jax.experimental.pallas import tpu as pltpu


# --------------------------------- kernel ------------------------------------
def cvae_kernel(
    x_dim, z_dim, n_real, y_dim,
    xs_ref, scol_ref, srow_ref, yt_ref, eps_ref,
    w1_ref, b1_ref, wlv_ref, blv_ref, wmu_ref, bmu_ref,
    wdy1_ref, bdy1_ref, wdy2t_ref, bdy2t_ref,
    wfz_ref, bfz_ref, wfx1_ref, bfx1_ref, wfx2_ref, bfx2_ref,
    ws0_ref, ws1_ref,
    ydect_ref, mi_ref, loss_ref,
):
    f32 = jnp.float32
    bf16 = jnp.bfloat16
    dn = (((1,), (1,)), ((), ()))     # contract last dim of both operands (A @ B^T)

    def mm(a, w_ref):                 # bf16 MXU matmul, f32 accumulation
        return jnp.dot(a.astype(bf16), w_ref[...], preferred_element_type=f32)

    xs = xs_ref[...]                  # (Np, x_dim + s_dim)  bf16
    x = xs[:, :x_dim]                 # offset-0 lane slice (cheap)
    s_col = scol_ref[...]             # (Np, 1) f32; {0,1} real rows, -1 sentinel on pad
    s_row = srow_ref[...]             # (1, Np) f32
    y_t = yt_ref[...]                 # (y_dim, Np) f32
    eps = eps_ref[...]                # (Np, z_dim) f32

    # ---- encoder_z1 (VariationalMLP: NO activation) ----
    h1 = mm(xs, w1_ref) + b1_ref[...]                           # (Np, z1_enc)
    logvar = jnp.exp(0.5 * (mm(h1, wlv_ref) + blv_ref[...]))    # exp(0.5 * linear)
    mu = mm(h1, wmu_ref) + bmu_ref[...]
    z1 = eps * mu + logvar                                      # z1_encoded (as written)

    # ---- decoder_y logits, produced lane-dense as (y_dim, Np) ----
    hy = jnp.maximum(mm(z1, wdy1_ref) + bdy1_ref[...], 0.0)     # ReLU, (Np, x_dec)
    ylogit_t = jax.lax.dot_general(wdy2t_ref[...], hy.astype(bf16), dn,
                                   preferred_element_type=f32) + bdy2t_ref[...]

    # shared transcendental: one exp drives sigmoid + both softplus branches
    e = jnp.exp(-jnp.abs(ylogit_t))
    l1p = jnp.log1p(e)
    inv = 1.0 / (1.0 + e)
    ydect_ref[...] = jnp.where(ylogit_t >= 0.0, inv, e * inv)   # stable sigmoid

    # ---- VFAELoss: alpha * BCE(y_dec, y), alpha = 1.0; PyTorch -100 log clamp ----
    neg_log_p = jnp.minimum(jnp.maximum(-ylogit_t, 0.0) + l1p, 100.0)  # -log(sigmoid)
    neg_log_1mp = jnp.minimum(jnp.maximum(ylogit_t, 0.0) + l1p, 100.0) # -log(1-sigmoid)
    valid = (s_row >= 0.0).astype(f32)                          # (1, Np) real-row mask
    bce = (y_t * neg_log_p + (1.0 - y_t) * neg_log_1mp) * valid
    loss_ref[0, 0] = jnp.sum(bce) * (1.0 / float(n_real * y_dim))

    # ---- kl_gaussian per example, lane-dense (1, Np) via ones-vector dot ----
    kl_terms = -logvar - 1.0 + jnp.exp(logvar) + mu * mu        # (Np, z)
    ones_1z = jnp.ones((1, z_dim), f32)
    kl_row = 0.5 * jax.lax.dot_general(ones_1z, kl_terms, dn,
                                       preferred_element_type=f32)      # (1, Np)

    # ---- CPC NCE ----
    f_z = mm(z1, wfz_ref) + bfz_ref[...]                        # (Np, z)
    hfx = jnp.maximum(mm(x, wfx1_ref) + bfx1_ref[...], 0.0)
    f_x = mm(hfx, wfx2_ref) + bfx2_ref[...]                     # (Np, z)
    A0 = mm(f_x, ws0_ref)                                       # (Np, z) = f_x @ W_s[0]
    A1 = mm(f_x, ws1_ref)                                       # (Np, z) = f_x @ W_s[1]
    A_sel = jnp.where(s_col == 0.0, A0, A1)                     # per-row operand select

    # T_i = softplus(A_sel_i . f_z_i), lane-dense
    prod = A_sel * f_z
    t_raw = jax.lax.dot_general(ones_1z, prod, dn,
                                preferred_element_type=f32)             # (1, Np)
    T_row = jnp.maximum(t_raw, 0.0) + jnp.log1p(jnp.exp(-jnp.abs(t_raw)))

    # S[i,j] = softplus(A_sel_i . f_z_j) — the only O(N^2) stage
    s_raw = jax.lax.dot_general(A_sel.astype(bf16), f_z.astype(bf16), dn,
                                preferred_element_type=f32)             # (Np, Np)
    S = jnp.maximum(s_raw, 0.0) + jnp.log1p(jnp.exp(-jnp.abs(s_raw)))
    # TODO(synk): on v6e/v7x this softplus can run in bf16 (EUP-bound); kept f32 for v5e.

    # neg_T via one-hot class column-sums (padded cols have s=-1 -> both rows zero)
    onehot = jnp.concatenate([(s_row == 0.0).astype(f32),
                              (s_row == 1.0).astype(f32)], axis=0)      # (2, Np)
    colsum = jax.lax.dot_general(onehot, S, dn,
                                 preferred_element_type=f32)            # (2, Np)
    negT_row = jnp.where(s_row == 0.0, colsum[0:1, :], colsum[1:2, :])  # (1, Np)

    nce_row = jnp.log(T_row + 1e-16) - jnp.log(negT_row + 1e-16)
    mi_ref[...] = kl_row - nce_row                              # (1, Np) == mi_sz^T


# --------------------------- host-side weight prep ----------------------------
def prepare_params(params):
    """Once-per-parameter-update prep (bf16 casts + decoder_y transpose), hoisted
    out of the per-forward path."""
    bf16, f32 = jnp.bfloat16, jnp.float32
    return {
        "w1": params["w1"].astype(bf16), "b1": params["b1"].astype(f32),
        "wlv": params["wlv"].astype(bf16), "blv": params["blv"].astype(f32),
        "wmu": params["wmu"].astype(bf16), "bmu": params["bmu"].astype(f32),
        "wdy1": params["wdy1"].astype(bf16), "bdy1": params["bdy1"].astype(f32),
        "wdy2t": jnp.transpose(params["wdy2"]).astype(bf16),
        "bdy2t": jnp.transpose(params["bdy2"]).astype(f32),
        "wfz": params["wfz"].astype(bf16), "bfz": params["bfz"].astype(f32),
        "wfx1": params["wfx1"].astype(bf16), "bfx1": params["bfx1"].astype(f32),
        "wfx2": params["wfx2"].astype(bf16), "bfx2": params["bfx2"].astype(f32),
        "ws0": params["ws"][0].astype(bf16), "ws1": params["ws"][1].astype(bf16),
    }


# --------------------------------- wrapper -----------------------------------
def cvae_forward(prepared, inputs, eps, *, x_dim, s_dim, y_dim):
    """Returns (vae_loss, mi_sz, y_prob) exactly like the PyTorch module."""
    f32, bf16 = jnp.float32, jnp.bfloat16
    N = inputs.shape[0]
    Np = ((N + 127) // 128) * 128                               # lane-align batch
    pad = Np - N

    xs = inputs[:, :x_dim + s_dim].astype(bf16)                 # (N, x+s)
    s = inputs[:, x_dim:x_dim + s_dim].astype(f32)[:, :1]       # (N, 1); s_dim == 1
    y = inputs[:, inputs.shape[1] - y_dim:].astype(f32)         # (N, y_dim)
    eps_p = eps.astype(f32)

    if pad:
        xs = jnp.pad(xs, ((0, pad), (0, 0)))
        s = jnp.pad(s, ((0, pad), (0, 0)), constant_values=-1.0)  # sentinel class
        y = jnp.pad(y, ((0, pad), (0, 0)))
        eps_p = jnp.pad(eps_p, ((0, pad), (0, 0)))

    s_col = s                                                    # (Np, 1)
    s_row = jnp.transpose(s)                                     # (1, Np)
    y_t = jnp.transpose(y)                                       # (y_dim, Np)
    z_dim = prepared["wmu"].shape[1]

    ops = [xs, s_col, s_row, y_t, eps_p,
           prepared["w1"], prepared["b1"],
           prepared["wlv"], prepared["blv"], prepared["wmu"], prepared["bmu"],
           prepared["wdy1"], prepared["bdy1"], prepared["wdy2t"], prepared["bdy2t"],
           prepared["wfz"], prepared["bfz"],
           prepared["wfx1"], prepared["bfx1"], prepared["wfx2"], prepared["bfx2"],
           prepared["ws0"], prepared["ws1"]]

    out_shapes = (
        jax.ShapeDtypeStruct((y_dim, Np), f32),   # y_decoded^T (lane-dense)
        jax.ShapeDtypeStruct((1, Np), f32),       # mi_sz^T     (lane-dense)
        jax.ShapeDtypeStruct((1, 1), f32),        # vae_loss    (SMEM scalar)
    )

    def full_spec(shape):
        nd = len(shape)
        return pl.BlockSpec(shape, lambda i, _nd=nd: (0,) * _nd)

    kernel = functools.partial(cvae_kernel, x_dim, z_dim, N, y_dim)

    y_dec_t, mi_row, loss = pl.pallas_call(
        kernel,
        out_shape=out_shapes,
        grid=(1,),
        in_specs=[full_spec(a.shape) for a in ops],
        out_specs=(full_spec(out_shapes[0].shape),
                   full_spec(out_shapes[1].shape),
                   pl.BlockSpec(memory_space=pltpu.MemorySpace.SMEM)),
        compiler_params=pltpu.CompilerParams(
            dimension_semantics=("arbitrary",),
            vmem_limit_bytes=32 * 1024 * 1024),
    )(*ops)

    vae_loss = loss[0, 0]
    mi_sz = jnp.transpose(mi_row[:, :N])                        # (N, 1) == mi_sz.unsqueeze(1)
    y_prob = jnp.squeeze(jnp.transpose(y_dec_t)[:N])            # matches y_decoded.squeeze()
    return vae_loss, mi_sz, y_prob


# ------------------------------ parameter init --------------------------------
def init_params(key, *, x_dim, s_dim, y_dim, z1_enc_dim, x_dec_dim, z_dim, nce_size, s_num):
    xs_dim = x_dim + s_dim
    shapes = {
        # encoder_z1 (VariationalMLP)
        "w1": (xs_dim, z1_enc_dim), "b1": (1, z1_enc_dim),
        "wlv": (z1_enc_dim, z_dim), "blv": (1, z_dim),
        "wmu": (z1_enc_dim, z_dim), "bmu": (1, z_dim),
        # decoder_y (DecoderMLP)
        "wdy1": (z_dim, x_dec_dim), "bdy1": (1, x_dec_dim),
        "wdy2": (x_dec_dim, y_dim), "bdy2": (1, y_dim),
        # CPC
        "wfx1": (x_dim, nce_size), "bfx1": (1, nce_size),
        "wfx2": (nce_size, z_dim), "bfx2": (1, z_dim),
        "wfz": (z_dim, z_dim), "bfz": (1, z_dim),
        "ws": (s_num, z_dim, z_dim),
    }
    params = {}
    for name, shp in shapes.items():
        key, sub = jax.random.split(key)
        scale = 1.0 if name == "ws" else 0.1       # w_s ~ randn in the torch module
        params[name] = scale * jax.random.normal(sub, shp, dtype=jnp.float32)
    return params


# ----------------------------------- main -------------------------------------
if __name__ == "__main__":
    # small, module-consistent shapes
    N = 8
    x_dim, s_dim, y_dim = 16, 1, 1
    z1_enc_dim, x_dec_dim, z_dim = 32, 32, 8
    nce_size, s_num = 16, 2

    key = jax.random.PRNGKey(0)
    kp, kx, ks, ky, ke = jax.random.split(key, 5)

    params = init_params(
        kp, x_dim=x_dim, s_dim=s_dim, y_dim=y_dim, z1_enc_dim=z1_enc_dim,
        x_dec_dim=x_dec_dim, z_dim=z_dim, nce_size=nce_size, s_num=s_num,
    )
    prepared = prepare_params(params)       # hoisted: once per parameter update

    x_in = jax.random.normal(kx, (N, x_dim), dtype=jnp.float32)
    s_in = jax.random.bernoulli(ks, 0.5, (N, s_dim)).astype(jnp.float32)   # {0,1}
    y_in = jax.random.bernoulli(ky, 0.5, (N, y_dim)).astype(jnp.float32)   # {0,1}
    inputs = jnp.concatenate([x_in, s_in, y_in], axis=1)                   # (N, x+s+y)
    eps = jax.random.normal(ke, (N, z_dim), dtype=jnp.float32)             # reparam noise

    fwd = jax.jit(functools.partial(cvae_forward, x_dim=x_dim, s_dim=s_dim, y_dim=y_dim))
    vae_loss, mi_sz, y_prob = fwd(prepared, inputs, eps)
    jax.block_until_ready((vae_loss, mi_sz, y_prob))

    assert vae_loss.shape == () and mi_sz.shape == (N, 1) and y_prob.shape == (N,)
    assert bool(jnp.all(jnp.isfinite(mi_sz))) and bool(jnp.isfinite(vae_loss))
    print("KERNEL_OK")
</pallas_src>

<mosaic_0001>
module attributes {stable_mosaic.version = 11 : i64} {
  func.func @cvae_kernel(%arg0: i32, %arg1: memref<128x17xbf16, #tpu.memory_space<vmem>>, %arg2: memref<128x1xf32, #tpu.memory_space<vmem>>, %arg3: memref<1x128xf32, #tpu.memory_space<vmem>>, %arg4: memref<1x128xf32, #tpu.memory_space<vmem>>, %arg5: memref<128x8xf32, #tpu.memory_space<vmem>>, %arg6: memref<17x32xbf16, #tpu.memory_space<vmem>>, %arg7: memref<1x32xf32, #tpu.memory_space<vmem>>, %arg8: memref<32x8xbf16, #tpu.memory_space<vmem>>, %arg9: memref<1x8xf32, #tpu.memory_space<vmem>>, %arg10: memref<32x8xbf16, #tpu.memory_space<vmem>>, %arg11: memref<1x8xf32, #tpu.memory_space<vmem>>, %arg12: memref<8x32xbf16, #tpu.memory_space<vmem>>, %arg13: memref<1x32xf32, #tpu.memory_space<vmem>>, %arg14: memref<1x32xbf16, #tpu.memory_space<vmem>>, %arg15: memref<1x1xf32, #tpu.memory_space<vmem>>, %arg16: memref<8x8xbf16, #tpu.memory_space<vmem>>, %arg17: memref<1x8xf32, #tpu.memory_space<vmem>>, %arg18: memref<16x16xbf16, #tpu.memory_space<vmem>>, %arg19: memref<1x16xf32, #tpu.memory_space<vmem>>, %arg20: memref<16x8xbf16, #tpu.memory_space<vmem>>, %arg21: memref<1x8xf32, #tpu.memory_space<vmem>>, %arg22: memref<8x8xbf16, #tpu.memory_space<vmem>>, %arg23: memref<8x8xbf16, #tpu.memory_space<vmem>>, %arg24: memref<1x128xf32, #tpu.memory_space<vmem>>, %arg25: memref<1x128xf32, #tpu.memory_space<vmem>>, %arg26: memref<1x1xf32, #tpu.memory_space<smem>>) attributes {dimension_semantics = [#tpu.dimension_semantics<arbitrary>], iteration_bounds = array<i64: 1>, scalar_prefetch = 0 : i64, scratch_operands = 0 : i64, tpu.core_type = #tpu.core_type<tc>, window_params = [{pipeline_mode = #tpu.pipeline_mode<synchronous>, transform_indices = @transform_0, window_bounds = array<i64: 128, 17>}, {pipeline_mode = #tpu.pipeline_mode<synchronous>, transform_indices = @transform_1, window_bounds = array<i64: 128, 1>}, {pipeline_mode = #tpu.pipeline_mode<synchronous>, transform_indices = @transform_2, window_bounds = array<i64: 1, 128>}, {pipeline_mode = #tpu.pipeline_mode<synchronous>, transform_indices = @transform_3, window_bounds = array<i64: 1, 128>}, {pipeline_mode = #tpu.pipeline_mode<synchronous>, transform_indices = @transform_4, window_bounds = array<i64: 128, 8>}, {pipeline_mode = #tpu.pipeline_mode<synchronous>, transform_indices = @transform_5, window_bounds = array<i64: 17, 32>}, {pipeline_mode = #tpu.pipeline_mode<synchronous>, transform_indices = @transform_6, window_bounds = array<i64: 1, 32>}, {pipeline_mode = #tpu.pipeline_mode<synchronous>, transform_indices = @transform_7, window_bounds = array<i64: 32, 8>}, {pipeline_mode = #tpu.pipeline_mode<synchronous>, transform_indices = @transform_8, window_bounds = array<i64: 1, 8>}, {pipeline_mode = #tpu.pipeline_mode<synchronous>, transform_indices = @transform_9, window_bounds = array<i64: 32, 8>}, {pipeline_mode = #tpu.pipeline_mode<synchronous>, transform_indices = @transform_10, window_bounds = array<i64: 1, 8>}, {pipeline_mode = #tpu.pipeline_mode<synchronous>, transform_indices = @transform_11, window_bounds = array<i64: 8, 32>}, {pipeline_mode = #tpu.pipeline_mode<synchronous>, transform_indices = @transform_12, window_bounds = array<i64: 1, 32>}, {pipeline_mode = #tpu.pipeline_mode<synchronous>, transform_indices = @transform_13, window_bounds = array<i64: 1, 32>}, {pipeline_mode = #tpu.pipeline_mode<synchronous>, transform_indices = @transform_14, window_bounds = array<i64: 1, 1>}, {pipeline_mode = #tpu.pipeline_mode<synchronous>, transform_indices = @transform_15, window_bounds = array<i64: 8, 8>}, {pipeline_mode = #tpu.pipeline_mode<synchronous>, transform_indices = @transform_16, window_bounds = array<i64: 1, 8>}, {pipeline_mode = #tpu.pipeline_mode<synchronous>, transform_indices = @transform_17, window_bounds = array<i64: 16, 16>}, {pipeline_mode = #tpu.pipeline_mode<synchronous>, transform_indices = @transform_18, window_bounds = array<i64: 1, 16>}, {pipeline_mode = #tpu.pipeline_mode<synchronous>, transform_indices = @transform_19, window_bounds = array<i64: 16, 8>}, {pipeline_mode = #tpu.pipeline_mode<synchronous>, transform_indices = @transform_20, window_bounds = array<i64: 1, 8>}, {pipeline_mode = #tpu.pipeline_mode<synchronous>, transform_indices = @transform_21, window_bounds = array<i64: 8, 8>}, {pipeline_mode = #tpu.pipeline_mode<synchronous>, transform_indices = @transform_22, window_bounds = array<i64: 8, 8>}, {pipeline_mode = #tpu.pipeline_mode<synchronous>, transform_indices = @transform_23, window_bounds = array<i64: 1, 128>}, {pipeline_mode = #tpu.pipeline_mode<synchronous>, transform_indices = @transform_24, window_bounds = array<i64: 1, 128>}, {transform_indices = @transform_25, window_bounds = array<i64: 1, 1>}]} {
    %c0 = arith.constant 0 : index
    %c0_0 = arith.constant 0 : index
    %0 = vector.load %arg1[%c0, %c0_0] : memref<128x17xbf16, #tpu.memory_space<vmem>>, vector<128x17xbf16>
    %1 = vector.extract_strided_slice %0 {offsets = [0, 0], sizes = [128, 16], strides = [1, 1]} : vector<128x17xbf16> to vector<128x16xbf16>
    %c0_1 = arith.constant 0 : index
    %c0_2 = arith.constant 0 : index
    %2 = vector.load %arg2[%c0_1, %c0_2] : memref<128x1xf32, #tpu.memory_space<vmem>>, vector<128x1xf32>
    %c0_3 = arith.constant 0 : index
    %c0_4 = arith.constant 0 : index
    %3 = vector.load %arg3[%c0_3, %c0_4] : memref<1x128xf32, #tpu.memory_space<vmem>>, vector<1x128xf32>
    %c0_5 = arith.constant 0 : index
    %c0_6 = arith.constant 0 : index
    %4 = vector.load %arg4[%c0_5, %c0_6] : memref<1x128xf32, #tpu.memory_space<vmem>>, vector<1x128xf32>
    %c0_7 = arith.constant 0 : index
    %c0_8 = arith.constant 0 : index
    %5 = vector.load %arg5[%c0_7, %c0_8] : memref<128x8xf32, #tpu.memory_space<vmem>>, vector<128x8xf32>
    %c0_9 = arith.constant 0 : index
    %c0_10 = arith.constant 0 : index
    %6 = vector.load %arg6[%c0_9, %c0_10] : memref<17x32xbf16, #tpu.memory_space<vmem>>, vector<17x32xbf16>
    %cst = arith.constant dense<0.000000e+00> : vector<128x32xf32>
    %7 = tpu.matmul %0, %6, %cst {dimension_numbers = #tpu.dot_dimension_numbers<[1], [0], [0], [1], [0, 0, 1, 1], [], []>} : vector<128x17xbf16>, vector<17x32xbf16>, vector<128x32xf32> -> vector<128x32xf32>
    %c0_11 = arith.constant 0 : index
    %c0_12 = arith.constant 0 : index
    %8 = vector.load %arg7[%c0_11, %c0_12] : memref<1x32xf32, #tpu.memory_space<vmem>>, vector<1x32xf32>
    %9 = vector.broadcast %8 : vector<1x32xf32> to vector<128x32xf32>
    %10 = arith.addf %7, %9 : vector<128x32xf32>
    %11 = arith.truncf %10 : vector<128x32xf32> to vector<128x32xbf16>
    %c0_13 = arith.constant 0 : index
    %c0_14 = arith.constant 0 : index
    %12 = vector.load %arg8[%c0_13, %c0_14] : memref<32x8xbf16, #tpu.memory_space<vmem>>, vector<32x8xbf16>
    %cst_15 = arith.constant dense<0.000000e+00> : vector<128x8xf32>
    %13 = tpu.matmul %11, %12, %cst_15 {dimension_numbers = #tpu.dot_dimension_numbers<[1], [0], [0], [1], [0, 0, 1, 1], [], []>} : vector<128x32xbf16>, vector<32x8xbf16>, vector<128x8xf32> -> vector<128x8xf32>
    %c0_16 = arith.constant 0 : index
    %c0_17 = arith.constant 0 : index
    %14 = vector.load %arg9[%c0_16, %c0_17] : memref<1x8xf32, #tpu.memory_space<vmem>>, vector<1x8xf32>
    %15 = vector.broadcast %14 : vector<1x8xf32> to vector<128x8xf32>
    %16 = arith.addf %13, %15 : vector<128x8xf32>
    %cst_18 = arith.constant 5.000000e-01 : f32
    %17 = vector.broadcast %cst_18 : f32 to vector<128x8xf32>
    %18 = arith.mulf %17, %16 : vector<128x8xf32>
    %19 = math.exp %18 : vector<128x8xf32>
    %20 = arith.truncf %10 : vector<128x32xf32> to vector<128x32xbf16>
    %c0_19 = arith.constant 0 : index
    %c0_20 = arith.constant 0 : index
    %21 = vector.load %arg10[%c0_19, %c0_20] : memref<32x8xbf16, #tpu.memory_space<vmem>>, vector<32x8xbf16>
    %cst_21 = arith.constant dense<0.000000e+00> : vector<128x8xf32>
    %22 = tpu.matmul %20, %21, %cst_21 {dimension_numbers = #tpu.dot_dimension_numbers<[1], [0], [0], [1], [0, 0, 1, 1], [], []>} : vector<128x32xbf16>, vector<32x8xbf16>, vector<128x8xf32> -> vector<128x8xf32>
    %c0_22 = arith.constant 0 : index
    %c0_23 = arith.constant 0 : index
    %23 = vector.load %arg11[%c0_22, %c0_23] : memref<1x8xf32, #tpu.memory_space<vmem>>, vector<1x8xf32>
    %24 = vector.broadcast %23 : vector<1x8xf32> to vector<128x8xf32>
    %25 = arith.addf %22, %24 : vector<128x8xf32>
    %26 = arith.mulf %5, %25 : vector<128x8xf32>
    %27 = arith.addf %26, %19 : vector<128x8xf32>
    %28 = arith.truncf %27 : vector<128x8xf32> to vector<128x8xbf16>
    %c0_24 = arith.constant 0 : index
    %c0_25 = arith.constant 0 : index
    %29 = vector.load %arg12[%c0_24, %c0_25] : memref<8x32xbf16, #tpu.memory_space<vmem>>, vector<8x32xbf16>
    %cst_26 = arith.constant dense<0.000000e+00> : vector<128x32xf32>
    %30 = tpu.matmul %28, %29, %cst_26 {dimension_numbers = #tpu.dot_dimension_numbers<[1], [0], [0], [1], [0, 0, 1, 1], [], []>} : vector<128x8xbf16>, vector<8x32xbf16>, vector<128x32xf32> -> vector<128x32xf32>
    %c0_27 = arith.constant 0 : index
    %c0_28 = arith.constant 0 : index
    %31 = vector.load %arg13[%c0_27, %c0_28] : memref<1x32xf32, #tpu.memory_space<vmem>>, vector<1x32xf32>
    %32 = vector.broadcast %31 : vector<1x32xf32> to vector<128x32xf32>
    %33 = arith.addf %30, %32 : vector<128x32xf32>
    %cst_29 = arith.constant 0.000000e+00 : f32
    %34 = vector.broadcast %cst_29 : f32 to vector<128x32xf32>
    %35 = arith.maximumf %33, %34 : vector<128x32xf32>
    %c0_30 = arith.constant 0 : index
    %c0_31 = arith.constant 0 : index
    %36 = vector.load %arg14[%c0_30, %c0_31] : memref<1x32xbf16, #tpu.memory_space<vmem>>, vector<1x32xbf16>
    %37 = arith.truncf %35 : vector<128x32xf32> to vector<128x32xbf16>
    %cst_32 = arith.constant dense<0.000000e+00> : vector<1x128xf32>
    %38 = tpu.matmul %36, %37, %cst_32 {dimension_numbers = #tpu.dot_dimension_numbers<[1], [1], [0], [0], [0, 0, 1, 0], [], []>} : vector<1x32xbf16>, vector<128x32xbf16>, vector<1x128xf32> -> vector<1x128xf32>
    %c0_33 = arith.constant 0 : index
    %c0_34 = arith.constant 0 : index
    %39 = vector.load %arg15[%c0_33, %c0_34] : memref<1x1xf32, #tpu.memory_space<vmem>>, vector<1x1xf32>
    %40 = vector.broadcast %39 : vector<1x1xf32> to vector<1x128xf32>
    %41 = arith.addf %38, %40 : vector<1x128xf32>
    %42 = math.absf %41 : vector<1x128xf32>
    %cst_35 = arith.constant 0.000000e+00 : f32
    %43 = vector.broadcast %cst_35 : f32 to vector<1x128xf32>
    %44 = arith.subf %43, %42 : vector<1x128xf32>
    %45 = math.exp %44 : vector<1x128xf32>
    %46 = math.log1p %45 : vector<1x128xf32>
    %cst_36 = arith.constant 1.000000e+00 : f32
    %47 = vector.broadcast %cst_36 : f32 to vector<1x128xf32>
    %48 = arith.addf %47, %45 : vector<1x128xf32>
    %cst_37 = arith.constant 1.000000e+00 : f32
    %49 = vector.broadcast %cst_37 : f32 to vector<1x128xf32>
    %50 = arith.divf %49, %48 : vector<1x128xf32>
    %cst_38 = arith.constant 0.000000e+00 : f32
    %51 = vector.broadcast %cst_38 : f32 to vector<1x128xf32>
    %52 = arith.cmpf oge, %41, %51 : vector<1x128xf32>
    %53 = arith.mulf %45, %50 : vector<1x128xf32>
    %54 = arith.select %52, %50, %53 : vector<1x128xi1>, vector<1x128xf32>
    %c0_39 = arith.constant 0 : index
    %c0_40 = arith.constant 0 : index
    %55 = vector.load %arg24[%c0_39, %c0_40] : memref<1x128xf32, #tpu.memory_space<vmem>>, vector<1x128xf32>
    tpu.vector_store %arg24[%c0_39, %c0_40], %54 {strides = array<i32>} : memref<1x128xf32, #tpu.memory_space<vmem>>, vector<1x128xf32>,
    %cst_41 = arith.constant 0.000000e+00 : f32
    %56 = vector.broadcast %cst_41 : f32 to vector<1x128xf32>
    %57 = arith.subf %56, %41 : vector<1x128xf32>
    %cst_42 = arith.constant 0.000000e+00 : f32
    %58 = vector.broadcast %cst_42 : f32 to vector<1x128xf32>
    %59 = arith.maximumf %57, %58 : vector<1x128xf32>
    %60 = arith.addf %59, %46 : vector<1x128xf32>
    %cst_43 = arith.constant 1.000000e+02 : f32
    %61 = vector.broadcast %cst_43 : f32 to vector<1x128xf32>
    %62 = arith.minimumf %60, %61 : vector<1x128xf32>
    %cst_44 = arith.constant 0.000000e+00 : f32
    %63 = vector.broadcast %cst_44 : f32 to vector<1x128xf32>
    %64 = arith.maximumf %41, %63 : vector<1x128xf32>
    %65 = arith.addf %64, %46 : vector<1x128xf32>
    %cst_45 = arith.constant 1.000000e+02 : f32
    %66 = vector.broadcast %cst_45 : f32 to vector<1x128xf32>
    %67 = arith.minimumf %65, %66 : vector<1x128xf32>
    %cst_46 = arith.constant 0.000000e+00 : f32
    %68 = vector.broadcast %cst_46 : f32 to vector<1x128xf32>
    %69 = arith.cmpf oge, %3, %68 : vector<1x128xf32>
    %70 = arith.extui %69 : vector<1x128xi1> to vector<1x128xi32>
    %71 = arith.sitofp %70 : vector<1x128xi32> to vector<1x128xf32>
    %72 = arith.mulf %4, %62 : vector<1x128xf32>
    %cst_47 = arith.constant 1.000000e+00 : f32
    %73 = vector.broadcast %cst_47 : f32 to vector<1x128xf32>
    %74 = arith.subf %73, %4 : vector<1x128xf32>
    %75 = arith.mulf %74, %67 : vector<1x128xf32>
    %76 = arith.addf %72, %75 : vector<1x128xf32>
    %77 = arith.mulf %76, %71 : vector<1x128xf32>
    %78 = vector.shape_cast %77 : vector<1x128xf32> to vector<1x1x128xf32>
    %cst_48 = arith.constant dense<0.000000e+00> : vector<1xf32>
    %79 = vector.multi_reduction <add>, %78, %cst_48 [1, 2] : vector<1x1x128xf32> to vector<1xf32>
    %80 = vector.shape_cast %79 : vector<1xf32> to vector<1x1x1xf32>
    %81 = vector.extract %80[0, 0, 0] : f32 from vector<1x1x1xf32>
    %cst_49 = arith.constant 1.250000e-01 : f32
    %82 = arith.mulf %81, %cst_49 : f32
    %c0_50 = arith.constant 0 : index
    %c0_51 = arith.constant 0 : index
    %83 = memref.load %arg26[%c0_50, %c0_51] : memref<1x1xf32, #tpu.memory_space<smem>>
    memref.store %82, %arg26[%c0_50, %c0_51] : memref<1x1xf32, #tpu.memory_space<smem>>
    %cst_52 = arith.constant 0.000000e+00 : f32
    %84 = vector.broadcast %cst_52 : f32 to vector<128x8xf32>
    %85 = arith.subf %84, %19 : vector<128x8xf32>
    %cst_53 = arith.constant 1.000000e+00 : f32
    %86 = vector.broadcast %cst_53 : f32 to vector<128x8xf32>
    %87 = arith.subf %85, %86 : vector<128x8xf32>
    %88 = math.exp %19 : vector<128x8xf32>
    %89 = arith.addf %87, %88 : vector<128x8xf32>
    %90 = arith.mulf %25, %25 : vector<128x8xf32>
    %91 = arith.addf %89, %90 : vector<128x8xf32>
    %cst_54 = arith.constant 1.000000e+00 : f32
    %92 = vector.broadcast %cst_54 : f32 to vector<1x8xf32>
    %cst_55 = arith.constant dense<0.000000e+00> : vector<1x128xf32>
    %93 = tpu.matmul %92, %91, %cst_55 {dimension_numbers = #tpu.dot_dimension_numbers<[1], [1], [0], [0], [0, 0, 1, 0], [], []>} : vector<1x8xf32>, vector<128x8xf32>, vector<1x128xf32> -> vector<1x128xf32>
    %cst_56 = arith.constant 5.000000e-01 : f32
    %94 = vector.broadcast %cst_56 : f32 to vector<1x128xf32>
    %95 = arith.mulf %94, %93 : vector<1x128xf32>
    %96 = arith.truncf %27 : vector<128x8xf32> to vector<128x8xbf16>
    %c0_57 = arith.constant 0 : index
    %c0_58 = arith.constant 0 : index
    %97 = vector.load %arg16[%c0_57, %c0_58] : memref<8x8xbf16, #tpu.memory_space<vmem>>, vector<8x8xbf16>
    %cst_59 = arith.constant dense<0.000000e+00> : vector<128x8xf32>
    %98 = tpu.matmul %96, %97, %cst_59 {dimension_numbers = #tpu.dot_dimension_numbers<[1], [0], [0], [1], [0, 0, 1, 1], [], []>} : vector<128x8xbf16>, vector<8x8xbf16>, vector<128x8xf32> -> vector<128x8xf32>
    %c0_60 = arith.constant 0 : index
    %c0_61 = arith.constant 0 : index
    %99 = vector.load %arg17[%c0_60, %c0_61] : memref<1x8xf32, #tpu.memory_space<vmem>>, vector<1x8xf32>
    %100 = vector.broadcast %99 : vector<1x8xf32> to vector<128x8xf32>
    %101 = arith.addf %98, %100 : vector<128x8xf32>
    %c0_62 = arith.constant 0 : index
    %c0_63 = arith.constant 0 : index
    %102 = vector.load %arg18[%c0_62, %c0_63] : memref<16x16xbf16, #tpu.memory_space<vmem>>, vector<16x16xbf16>
    %cst_64 = arith.constant dense<0.000000e+00> : vector<128x16xf32>
    %103 = tpu.matmul %1, %102, %cst_64 {dimension_numbers = #tpu.dot_dimension_numbers<[1], [0], [0], [1], [0, 0, 1, 1], [], []>} : vector<128x16xbf16>, vector<16x16xbf16>, vector<128x16xf32> -> vector<128x16xf32>
    %c0_65 = arith.constant 0 : index
    %c0_66 = arith.constant 0 : index
    %104 = vector.load %arg19[%c0_65, %c0_66] : memref<1x16xf32, #tpu.memory_space<vmem>>, vector<1x16xf32>
    %105 = vector.broadcast %104 : vector<1x16xf32> to vector<128x16xf32>
    %106 = arith.addf %103, %105 : vector<128x16xf32>
    %cst_67 = arith.constant 0.000000e+00 : f32
    %107 = vector.broadcast %cst_67 : f32 to vector<128x16xf32>
    %108 = arith.maximumf %106, %107 : vector<128x16xf32>
    %109 = arith.truncf %108 : vector<128x16xf32> to vector<128x16xbf16>
    %c0_68 = arith.constant 0 : index
    %c0_69 = arith.constant 0 : index
    %110 = vector.load %arg20[%c0_68, %c0_69] : memref<16x8xbf16, #tpu.memory_space<vmem>>, vector<16x8xbf16>
    %cst_70 = arith.constant dense<0.000000e+00> : vector<128x8xf32>
    %111 = tpu.matmul %109, %110, %cst_70 {dimension_numbers = #tpu.dot_dimension_numbers<[1], [0], [0], [1], [0, 0, 1, 1], [], []>} : vector<128x16xbf16>, vector<16x8xbf16>, vector<128x8xf32> -> vector<128x8xf32>
    %c0_71 = arith.constant 0 : index
    %c0_72 = arith.constant 0 : index
    %112 = vector.load %arg21[%c0_71, %c0_72] : memref<1x8xf32, #tpu.memory_space<vmem>>, vector<1x8xf32>
    %113 = vector.broadcast %112 : vector<1x8xf32> to vector<128x8xf32>
    %114 = arith.addf %111, %113 : vector<128x8xf32>
    %115 = arith.truncf %114 : vector<128x8xf32> to vector<128x8xbf16>
    %c0_73 = arith.constant 0 : index
    %c0_74 = arith.constant 0 : index
    %116 = vector.load %arg22[%c0_73, %c0_74] : memref<8x8xbf16, #tpu.memory_space<vmem>>, vector<8x8xbf16>
    %cst_75 = arith.constant dense<0.000000e+00> : vector<128x8xf32>
    %117 = tpu.matmul %115, %116, %cst_75 {dimension_numbers = #tpu.dot_dimension_numbers<[1], [0], [0], [1], [0, 0, 1, 1], [], []>} : vector<128x8xbf16>, vector<8x8xbf16>, vector<128x8xf32> -> vector<128x8xf32>
    %118 = arith.truncf %114 : vector<128x8xf32> to vector<128x8xbf16>
    %c0_76 = arith.constant 0 : index
    %c0_77 = arith.constant 0 : index
    %119 = vector.load %arg23[%c0_76, %c0_77] : memref<8x8xbf16, #tpu.memory_space<vmem>>, vector<8x8xbf16>
    %cst_78 = arith.constant dense<0.000000e+00> : vector<128x8xf32>
    %120 = tpu.matmul %118, %119, %cst_78 {dimension_numbers = #tpu.dot_dimension_numbers<[1], [0], [0], [1], [0, 0, 1, 1], [], []>} : vector<128x8xbf16>, vector<8x8xbf16>, vector<128x8xf32> -> vector<128x8xf32>
    %cst_79 = arith.constant 0.000000e+00 : f32
    %121 = vector.broadcast %cst_79 : f32 to vector<128x1xf32>
    %122 = arith.cmpf oeq, %2, %121 : vector<128x1xf32>
    %123 = vector.shape_cast %122 : vector<128x1xi1> to vector<128x1xi1>
    %124 = vector.broadcast %123 : vector<128x1xi1> to vector<128x8xi1>
    %125 = arith.select %124, %117, %120 : vector<128x8xi1>, vector<128x8xf32>
    %126 = arith.mulf %125, %101 : vector<128x8xf32>
    %cst_80 = arith.constant dense<0.000000e+00> : vector<1x128xf32>
    %127 = tpu.matmul %92, %126, %cst_80 {dimension_numbers = #tpu.dot_dimension_numbers<[1], [1], [0], [0], [0, 0, 1, 0], [], []>} : vector<1x8xf32>, vector<128x8xf32>, vector<1x128xf32> -> vector<1x128xf32>
    %cst_81 = arith.constant 0.000000e+00 : f32
    %128 = vector.broadcast %cst_81 : f32 to vector<1x128xf32>
    %129 = arith.maximumf %127, %128 : vector<1x128xf32>
    %130 = math.absf %127 : vector<1x128xf32>
    %cst_82 = arith.constant 0.000000e+00 : f32
    %131 = vector.broadcast %cst_82 : f32 to vector<1x128xf32>
    %132 = arith.subf %131, %130 : vector<1x128xf32>
    %133 = math.exp %132 : vector<1x128xf32>
    %134 = math.log1p %133 : vector<1x128xf32>
    %135 = arith.addf %129, %134 : vector<1x128xf32>
    %136 = arith.truncf %125 : vector<128x8xf32> to vector<128x8xbf16>
    %137 = arith.truncf %101 : vector<128x8xf32> to vector<128x8xbf16>
    %cst_83 = arith.constant dense<0.000000e+00> : vector<128x128xf32>
    %138 = tpu.matmul %136, %137, %cst_83 {dimension_numbers = #tpu.dot_dimension_numbers<[1], [1], [0], [0], [0, 0, 1, 0], [], []>} : vector<128x8xbf16>, vector<128x8xbf16>, vector<128x128xf32> -> vector<128x128xf32>
    %cst_84 = arith.constant 0.000000e+00 : f32
    %139 = vector.broadcast %cst_84 : f32 to vector<128x128xf32>
    %140 = arith.maximumf %138, %139 : vector<128x128xf32>
    %141 = math.absf %138 : vector<128x128xf32>
    %cst_85 = arith.constant 0.000000e+00 : f32
    %142 = vector.broadcast %cst_85 : f32 to vector<128x128xf32>
    %143 = arith.subf %142, %141 : vector<128x128xf32>
    %144 = math.exp %143 : vector<128x128xf32>
    %145 = math.log1p %144 : vector<128x128xf32>
    %146 = arith.addf %140, %145 : vector<128x128xf32>
    %cst_86 = arith.constant 0.000000e+00 : f32
    %147 = vector.broadcast %cst_86 : f32 to vector<1x128xf32>
    %148 = arith.cmpf oeq, %3, %147 : vector<1x128xf32>
    %149 = arith.extui %148 : vector<1x128xi1> to vector<1x128xi32>
    %150 = arith.sitofp %149 : vector<1x128xi32> to vector<1x128xf32>
    %cst_87 = arith.constant 1.000000e+00 : f32
    %151 = vector.broadcast %cst_87 : f32 to vector<1x128xf32>
    %152 = arith.cmpf oeq, %3, %151 : vector<1x128xf32>
    %153 = arith.extui %152 : vector<1x128xi1> to vector<1x128xi32>
    %154 = arith.sitofp %153 : vector<1x128xi32> to vector<1x128xf32>
    %155 = tpu.concatenate %150, %154 in 0 : vector<1x128xf32>, vector<1x128xf32> -> vector<2x128xf32>
    %cst_88 = arith.constant dense<0.000000e+00> : vector<2x128xf32>
    %156 = tpu.matmul %155, %146, %cst_88 {dimension_numbers = #tpu.dot_dimension_numbers<[1], [1], [0], [0], [0, 0, 1, 0], [], []>} : vector<2x128xf32>, vector<128x128xf32>, vector<2x128xf32> -> vector<2x128xf32>
    %cst_89 = arith.constant 0.000000e+00 : f32
    %157 = vector.broadcast %cst_89 : f32 to vector<1x128xf32>
    %158 = arith.cmpf oeq, %3, %157 : vector<1x128xf32>
    %159 = vector.extract_strided_slice %156 {offsets = [0, 0], sizes = [1, 128], strides = [1, 1]} : vector<2x128xf32> to vector<1x128xf32>
    %160 = vector.extract_strided_slice %156 {offsets = [1, 0], sizes = [1, 128], strides = [1, 1]} : vector<2x128xf32> to vector<1x128xf32>
    %161 = arith.select %158, %159, %160 : vector<1x128xi1>, vector<1x128xf32>
    %cst_90 = arith.constant 1.000000e-16 : f32
    %162 = vector.broadcast %cst_90 : f32 to vector<1x128xf32>
    %163 = arith.addf %135, %162 : vector<1x128xf32>
    %164 = math.log %163 : vector<1x128xf32>
    %cst_91 = arith.constant 1.000000e-16 : f32
    %165 = vector.broadcast %cst_91 : f32 to vector<1x128xf32>
    %166 = arith.addf %161, %165 : vector<1x128xf32>
    %167 = math.log %166 : vector<1x128xf32>
    %168 = arith.subf %164, %167 : vector<1x128xf32>
    %169 = arith.subf %95, %168 : vector<1x128xf32>
    %c0_92 = arith.constant 0 : index
    %c0_93 = arith.constant 0 : index
    %170 = vector.load %arg25[%c0_92, %c0_93] : memref<1x128xf32, #tpu.memory_space<vmem>>, vector<1x128xf32>
    tpu.vector_store %arg25[%c0_92, %c0_93], %169 {strides = array<i32>} : memref<1x128xf32, #tpu.memory_space<vmem>>, vector<1x128xf32>,
    return
  }
  func.func @transform_0(%arg0: i32) -> (i32, i32) {
    %c0_i32 = arith.constant 0 : i32
    %c0_i32_0 = arith.constant 0 : i32
    %c0_i32_1 = arith.constant 0 : i32
    return %c0_i32, %c0_i32_0 : i32, i32
  }
  func.func @transform_1(%arg0: i32) -> (i32, i32) {
    %c0_i32 = arith.constant 0 : i32
    %c0_i32_0 = arith.constant 0 : i32
    %c0_i32_1 = arith.constant 0 : i32
    return %c0_i32, %c0_i32_0 : i32, i32
  }
  func.func @transform_2(%arg0: i32) -> (i32, i32) {
    %c0_i32 = arith.constant 0 : i32
    %c0_i32_0 = arith.constant 0 : i32
    %c0_i32_1 = arith.constant 0 : i32
    return %c0_i32, %c0_i32_0 : i32, i32
  }
  func.func @transform_3(%arg0: i32) -> (i32, i32) {
    %c0_i32 = arith.constant 0 : i32
    %c0_i32_0 = arith.constant 0 : i32
    %c0_i32_1 = arith.constant 0 : i32
    return %c0_i32, %c0_i32_0 : i32, i32
  }
  func.func @transform_4(%arg0: i32) -> (i32, i32) {
    %c0_i32 = arith.constant 0 : i32
    %c0_i32_0 = arith.constant 0 : i32
    %c0_i32_1 = arith.constant 0 : i32
    return %c0_i32, %c0_i32_0 : i32, i32
  }
  func.func @transform_5(%arg0: i32) -> (i32, i32) {
    %c0_i32 = arith.constant 0 : i32
    %c0_i32_0 = arith.constant 0 : i32
    %c0_i32_1 = arith.constant 0 : i32
    return %c0_i32, %c0_i32_0 : i32, i32
  }
  func.func @transform_6(%arg0: i32) -> (i32, i32) {
    %c0_i32 = arith.constant 0 : i32
    %c0_i32_0 = arith.constant 0 : i32
    %c0_i32_1 = arith.constant 0 : i32
    return %c0_i32, %c0_i32_0 : i32, i32
  }
  func.func @transform_7(%arg0: i32) -> (i32, i32) {
    %c0_i32 = arith.constant 0 : i32
    %c0_i32_0 = arith.constant 0 : i32
    %c0_i32_1 = arith.constant 0 : i32
    return %c0_i32, %c0_i32_0 : i32, i32
  }
  func.func @transform_8(%arg0: i32) -> (i32, i32) {
    %c0_i32 = arith.constant 0 : i32
    %c0_i32_0 = arith.constant 0 : i32
    %c0_i32_1 = arith.constant 0 : i32
    return %c0_i32, %c0_i32_0 : i32, i32
  }
  func.func @transform_9(%arg0: i32) -> (i32, i32) {
    %c0_i32 = arith.constant 0 : i32
    %c0_i32_0 = arith.constant 0 : i32
    %c0_i32_1 = arith.constant 0 : i32
    return %c0_i32, %c0_i32_0 : i32, i32
  }
  func.func @transform_10(%arg0: i32) -> (i32, i32) {
    %c0_i32 = arith.constant 0 : i32
    %c0_i32_0 = arith.constant 0 : i32
    %c0_i32_1 = arith.constant 0 : i32
    return %c0_i32, %c0_i32_0 : i32, i32
  }
  func.func @transform_11(%arg0: i32) -> (i32, i32) {
    %c0_i32 = arith.constant 0 : i32
    %c0_i32_0 = arith.constant 0 : i32
    %c0_i32_1 = arith.constant 0 : i32
    return %c0_i32, %c0_i32_0 : i32, i32
  }
  func.func @transform_12(%arg0: i32) -> (i32, i32) {
    %c0_i32 = arith.constant 0 : i32
    %c0_i32_0 = arith.constant 0 : i32
    %c0_i32_1 = arith.constant 0 : i32
    return %c0_i32, %c0_i32_0 : i32, i32
  }
  func.func @transform_13(%arg0: i32) -> (i32, i32) {
    %c0_i32 = arith.constant 0 : i32
    %c0_i32_0 = arith.constant 0 : i32
    %c0_i32_1 = arith.constant 0 : i32
    return %c0_i32, %c0_i32_0 : i32, i32
  }
  func.func @transform_14(%arg0: i32) -> (i32, i32) {
    %c0_i32 = arith.constant 0 : i32
    %c0_i32_0 = arith.constant 0 : i32
    %c0_i32_1 = arith.constant 0 : i32
    return %c0_i32, %c0_i32_0 : i32, i32
  }
  func.func @transform_15(%arg0: i32) -> (i32, i32) {
    %c0_i32 = arith.constant 0 : i32
    %c0_i32_0 = arith.constant 0 : i32
    %c0_i32_1 = arith.constant 0 : i32
    return %c0_i32, %c0_i32_0 : i32, i32
  }
  func.func @transform_16(%arg0: i32) -> (i32, i32) {
    %c0_i32 = arith.constant 0 : i32
    %c0_i32_0 = arith.constant 0 : i32
    %c0_i32_1 = arith.constant 0 : i32
    return %c0_i32, %c0_i32_0 : i32, i32
  }
  func.func @transform_17(%arg0: i32) -> (i32, i32) {
    %c0_i32 = arith.constant 0 : i32
    %c0_i32_0 = arith.constant 0 : i32
    %c0_i32_1 = arith.constant 0 : i32
    return %c0_i32, %c0_i32_0 : i32, i32
  }
  func.func @transform_18(%arg0: i32) -> (i32, i32) {
    %c0_i32 = arith.constant 0 : i32
    %c0_i32_0 = arith.constant 0 : i32
    %c0_i32_1 = arith.constant 0 : i32
    return %c0_i32, %c0_i32_0 : i32, i32
  }
  func.func @transform_19(%arg0: i32) -> (i32, i32) {
    %c0_i32 = arith.constant 0 : i32
    %c0_i32_0 = arith.constant 0 : i32
    %c0_i32_1 = arith.constant 0 : i32
    return %c0_i32, %c0_i32_0 : i32, i32
  }
  func.func @transform_20(%arg0: i32) -> (i32, i32) {
    %c0_i32 = arith.constant 0 : i32
    %c0_i32_0 = arith.constant 0 : i32
    %c0_i32_1 = arith.constant 0 : i32
    return %c0_i32, %c0_i32_0 : i32, i32
  }
  func.func @transform_21(%arg0: i32) -> (i32, i32) {
    %c0_i32 = arith.constant 0 : i32
    %c0_i32_0 = arith.constant 0 : i32
    %c0_i32_1 = arith.constant 0 : i32
    return %c0_i32, %c0_i32_0 : i32, i32
  }
  func.func @transform_22(%arg0: i32) -> (i32, i32) {
    %c0_i32 = arith.constant 0 : i32
    %c0_i32_0 = arith.constant 0 : i32
    %c0_i32_1 = arith.constant 0 : i32
    return %c0_i32, %c0_i32_0 : i32, i32
  }
  func.func @transform_23(%arg0: i32) -> (i32, i32) {
    %c0_i32 = arith.constant 0 : i32
    %c0_i32_0 = arith.constant 0 : i32
    %c0_i32_1 = arith.constant 0 : i32
    return %c0_i32, %c0_i32_0 : i32, i32
  }
  func.func @transform_24(%arg0: i32) -> (i32, i32) {
    %c0_i32 = arith.constant 0 : i32
    %c0_i32_0 = arith.constant 0 : i32
    %c0_i32_1 = arith.constant 0 : i32
    return %c0_i32, %c0_i32_0 : i32, i32
  }
  func.func @transform_25(%arg0: i32) -> (i32, i32) {
    %c0_i32 = arith.constant 0 : i32
    %c0_i32_0 = arith.constant 0 : i32
    %c0_i32_1 = arith.constant 0 : i32
    return %c0_i32, %c0_i32_0 : i32, i32
  }
}

</mosaic_0001>

<bundles_post_ra>
// kernel: cvae_forward.1
= control target key start
LH: loop header
LB: loop body
LE: loop exit
PB: predicated region body
PF: predicated region fallthrough
CT: control target
= control target key end

     0   :  { %s4750_s0 = inlined_call_operand.vmem [shape: bf16[128,17], index: 0, kind: input, shape index: {}]   ;;  %s4751_s1 = inlined_call_operand.vmem [shape: f32[128,1], index: 1, kind: input, shape index: {}]   ;;  %s4752_s2 = inlined_call_operand.vmem [shape: f32[1,128], index: 2, kind: input, shape index: {}]   ;;  %s4753_s3 = inlined_call_operand.vmem [shape: f32[1,128], index: 3, kind: input, shape index: {}]   ;;  %s4754_s4 = inlined_call_operand.vmem [shape: f32[128,8], index: 4, kind: input, shape index: {}]   ;;  %s4755_s5 = inlined_call_operand.vmem [shape: bf16[17,32], index: 5, kind: input, shape index: {}]   ;;  %s4756_s6 = inlined_call_operand.vmem [shape: f32[1,32], index: 6, kind: input, shape index: {}]   ;;  %s4757_s7 = inlined_call_operand.vmem [shape: bf16[32,8], index: 7, kind: input, shape index: {}]   ;;  %s4758_s8 = inlined_call_operand.vmem [shape: f32[1,8], index: 8, kind: input, shape index: {}]   ;;  %s4759_s9 = inlined_call_operand.vmem [shape: bf16[32,8], index: 9, kind: input, shape index: {}]   ;;  %s4760_s10 = inlined_call_operand.vmem [shape: f32[1,8], index: 10, kind: input, shape index: {}]   ;;  %s4761_s11 = inlined_call_operand.vmem [shape: bf16[8,32], index: 11, kind: input, shape index: {}]   ;;  %s4762_s12 = inlined_call_operand.vmem [shape: f32[1,32], index: 12, kind: input, shape index: {}]   ;;  %s4763_s13 = inlined_call_operand.vmem [shape: bf16[1,32], index: 13, kind: input, shape index: {}]   ;;  %s4764_s14 = inlined_call_operand.<no memory space> [shape: f32[1,1], index: 14, kind: input, shape index: {}]   ;;  %s4765_s15 = inlined_call_operand.vmem [shape: bf16[8,8], index: 15, kind: input, shape index: {}]   ;;  %s4766_s16 = inlined_call_operand.vmem [shape: f32[1,8], index: 16, kind: input, shape index: {}]   ;;  %s4767_s17 = inlined_call_operand.vmem [shape: bf16[16,16], index: 17, kind: input, shape index: {}]   ;;  %s4768_s18 = inlined_call_operand.vmem [shape: f32[1,16], index: 18, kind: input, shape index: {}]   ;;  %s4769_s19 = inlined_call_operand.vmem [shape: bf16[16,8], index: 19, kind: input, shape index: {}]   ;;  %s4770_s20 = inlined_call_operand.vmem [shape: f32[1,8], index: 20, kind: input, shape index: {}]   ;;  %s4771_s21 = inlined_call_operand.vmem [shape: bf16[8,8], index: 21, kind: input, shape index: {}]   ;;  %s4772_s22 = inlined_call_operand.vmem [shape: bf16[8,8], index: 22, kind: input, shape index: {}]   ;;  %s4773_s23 = inlined_call_operand.vmem [shape: f32[1,128], index: 23, kind: output, shape index: {0}]   ;;  %s4774_s24 = inlined_call_operand.vmem [shape: f32[1,128], index: 24, kind: output, shape index: {1}]   ;;  %s4775_s25 = inlined_call_operand.hbm [shape: f32[1,1], index: 25, kind: output, shape index: {2}]  }
   0x1   :  { %4783 = sst [smem:[#allocation6_spill]] %s4750_s0  ;;  %v31_v0 = vstv %s4764_s14 }
   0x2   :  { %4784 = sst [smem:[#allocation7_spill]] %s4751_s1  ;;  %32 = vst [vmem:[#allocation2] sm:$0x1] %v31_v0 }
   0x3   :  { %4785 = sst [smem:[#allocation8_spill]] %s4752_s2 }
   0x4   :  { %4786 = sst [smem:[#allocation9_spill]] %s4753_s3 }
   0x5   :  { %4787 = sst [smem:[#allocation10_spill]] %s4754_s4 }
   0x6   :  { %4788 = sst [smem:[#allocation11_spill]] %s4755_s5 }
   0x7   :  { %4789 = sst [smem:[#allocation12_spill]] %s4756_s6 }
   0x8   :  { %4790 = sst [smem:[#allocation13_spill]] %s4757_s7 }
   0x9   :  { %4791 = sst [smem:[#allocation14_spill]] %s4758_s8 }
   0xa   :  { %4792 = sst [smem:[#allocation15_spill]] %s4759_s9 }
   0xb   :  { %s4793_s7 = sld [smem:[#allocation11_spill]]  ;;  %vm215_vm0 = vcmask 1040384   ;;  %v3553_v3 = vmov 0   ;;  %s4794_s27 = sld [smem:[#allocation6_spill]]  ;;  %vm190_vm1 = vcmask 138240  }
   0xc   :  { %v217_v4 = vsel %vm215_vm0, 65535, %v3553_v3  ;;  %3372 = vset.pattern.permute.xlu0 %v3553_v3  ;;  %3373 = vset.pattern.permute.xlu1 %v3553_v3  ;;  %s4795_s29 = sld [smem:[#allocation15_spill]] }
  0x11   :  { %v3374_v1 = vld [vmem:[%s4793_s7] sm:$0xff]   ;;  %v3375_v2 = vld [vmem:[%s4793_s7 + $0x8] ss:$0 sps:$4 sm:$0x11]   ;;  %v3378_v8 = vld [vmem:[%s4794_s27 + $0x10] sm:$0xff]  }
  0x12   :  { %2938 = vmatprep.subr.bf16.mxu0 %v3374_v1  ;;  %v3376_v5 = vld [vmem:[%s4794_s27] sm:$0xff]   ;;  %v219_v6 = vand.u32 %v3375_v2, %v217_v4  ;;  %v3377_v7 = vld [vmem:[%s4794_s27 + $0x8] sm:$0xff]   ;;  %v3379_v10 = vld [vmem:[%s4794_s27 + $0x18] sm:$0xff]  }
  0x13   :  { %2939 = vmatpush3.bf16.msra.mxu0 %v3374_v1  ;;  %2942 = vmatprep.mubr.msk.bf16.mxu0 %vm190_vm1, %v3376_v5  ;;  %v3384_v9 = vld [vmem:[%s4795_s29] sm:$0xff]  }
  0x14   :  { %2940 = vmatprep.subr.bf16.mxu0 %v219_v6 }
  0x17   :  { %2941 = vmatpush3.bf16.msra.mxu0 %v219_v6 }
  0x18   :  { %2978 = vmatprep.subr.bf16.mxu0 %v3384_v9 }
  0x1a   :  { %2943 = vmatmul.mubr.msk.bf16.vlgmr.msra.gmra.mrb[0].mxu0 %vm190_vm1, %v3377_v7 }
  0x1b   :  { %2946 = vmatprep.mubr.msk.bf16.mxu0 %vm190_vm1, %v3378_v8  ;;  %2979 = vmatpush3.bf16.msra.mxu0 %v3384_v9 }
  0x1c   :  { %33 = vsyncpa [#allocation4], 0  ;;  %v3380_v11 = vld [vmem:[%s4794_s27 + $0x20] sm:$0xff]   ;;  %v3381_v12 = vld [vmem:[%s4794_s27 + $0x28] sm:$0xff]   ;;  %s4796_s5 = sld [smem:[#allocation13_spill]]  ;;  %vm712_vm2 = vcmask 1043456  }
  0x1d   :  { %v3382_v13 = vld [vmem:[%s4794_s27 + $0x30] sm:$0xff]   ;;  %v3383_v14 = vld [vmem:[%s4794_s27 + $0x38] sm:$0xff]   ;;  %v3387_v17 = vld [vmem:[%s4795_s29 + $0x8] sm:$0xff]   ;;  %s4797_s8 = sld [smem:[#allocation12_spill]]  ;;  %vm349_vm3 = vcmask 261120   ;;  %v3554_v61 = vmov 0.0|0.0  }
  0x1e   :  { %2980 = vmatprep.subr.bf16.mxu0 %v3387_v17  ;;  %v679_v18 = vld [vmem:[%s4761_s11] sm:$0xf]  ;;  %v3555_v62 = vmov 0.0   ;;  %vm3556_vm4 = vmmov 0   ;;  %s4798_s14 = sld [smem:[#allocation14_spill]]  ;;  %s4799_s0 = sld [smem:[#allocation10_spill]] }
  0x1f   :  { %2981 = vmatpush3.bf16.msra.mxu0 %v3387_v17  ;;  %v714_v30 = vsel %vm712_vm2, %v679_v18, 0  ;;  %vm687_vm5 = vcmask 64512   ;;  %s4804_s2 = sld [smem:[#allocation8_spill]]  ;;  %s3541_s11 = scalar_lea.hbm %s4775_s25, 16 }
  0x20   :  { %3016 = vmatprep.subr.bf16.mxu0 %v3555_v62  ;;  %vm3916_vm6 = vmpackc.low %vm687_vm5, %vm687_vm5  ;;  %p3542_p0 = scmp.ne.s32.totalorder %s4775_s25, %s3541_s11  ;;  %p3545_p1 = scmp.lt.u32.totalorder %s3541_s11, %s4775_s25 }
  0x22   :  { %2947 = vmatmul.mubr.msk.bf16.gmra.mrb[4].mxu0 %vm190_vm1, %v3379_v10  ;;  %v3385_v15 = vld [vmem:[%s4796_s5] sm:$0xff]   ;;  %v3386_v16 = vld [vmem:[%s4796_s5 + $0x8] sm:$0xff]   ;;  %p3547_p2 = pnand %p3545_p1, %p3542_p0 }
  0x23   :  { %2950 = vmatprep.mubr.msk.bf16.mxu0 %vm190_vm1, %v3380_v11  ;;  %2958 = vmatprep.subr.bf16.mxu1 %v3385_v15  ;;  %v2621_v20 = vld [vmem:[%s4797_s8] ss:$0 sm:$0xff] }
  0x24   :  { %2959 = vmatpush3.bf16.msra.mxu1 %v3385_v15  ;;  %v3778_v63 = vld [vmem:[%s4798_s14] ss:$0 sm:$0xff] }
  0x25   :  { %2960 = vmatprep.subr.bf16.mxu1 %v3386_v16  ;;  %v3785_v10 = vld [vmem:[%s4760_s10] ss:$0 sm:$0xff]  ;;  %s4802_s10 = sld [smem:[#allocation7_spill]] }
  0x28   :  { %2961 = vmatpush3.bf16.msra.mxu1 %v3386_v16 }
  0x29   :  { %3351 = vmatprep.subr.msk.bf16.mxu1 %vm712_vm2, %v679_v18 }
  0x2a   :  { %2951 = vmatmul.mubr.msk.bf16.gmra.mrb[8].mxu0 %vm190_vm1, %v3381_v12 }
  0x2b   :  { %2954 = vmatprep.mubr.msk.bf16.mxu0 %vm190_vm1, %v3382_v13 }
  0x32   :  { %2955 = vmatmul.mubr.msk.bf16.gmra.mrb[12].mxu0 %vm190_vm1, %v3383_v14 }
  0xed   :  { %v2944_v19 = vpop.f32.mrb[0].mxu0 }
  0xee   :  { %v255_v21 = vpop.f32.mrb[1].mxu0  ;;  %v264_v23 = vadd.f32 %v2944_v19, %v2621_v20 }
  0xef   :  { %v2945_v22 = vpop.f32.mrb[2].mxu0  ;;  %v256_v26 = vadd.f32 %v2621_v20, %v255_v21 }
  0xf0   :  { %v267_v24 = vadd.f32 %v2945_v22, %v2621_v20  ;;  %v258_v25 = vpop.f32.mrb[3].mxu0 }
  0xf1   :  { %v259_v27 = vadd.f32 %v2621_v20, %v258_v25 }
  0xf2   :  { %v319_v28 = vpack.c.bf16 %v267_v24, %v264_v23  ;;  %v115_v24 = vld [vmem:[%s4799_s0] sm:$0xff] }
  0xf3   :  { %v318_v29 = vpack.c.bf16 %v259_v27, %v256_v26 }
  0xf5   :  { %v2948_v31 = vpop.f32.mrb[4].mxu0  ;;  %2962 = vmatprep.mubr.msk.bf16.mxu1 %vm349_vm3, %v318_v29  ;;  %2982 = vmatprep.mubr.msk.bf16.mxu0 %vm349_vm3, %v318_v29 }
  0xf6   :  { %v280_v32 = vadd.f32 %v2948_v31, %v2621_v20  ;;  %v271_v33 = vpop.f32.mrb[5].mxu0  ;;  %2963 = vmatmul.mubr.msk.bf16.vlgmr.msra.gmra.mrb[0].mxu1 %vm349_vm3, %v319_v28  ;;  %2983 = vmatmul.mubr.msk.bf16.vlgmr.msra.gmra.mrb[16].mxu0 %vm349_vm3, %v319_v28 }
  0xf7   :  { %v272_v34 = vadd.f32 %v2621_v20, %v271_v33  ;;  %v2949_v35 = vpop.f32.mrb[6].mxu0  ;;  %2999 = vmatpush3.bf16.msra.mxu1 %v714_v30 }
  0xf8   :  { %v283_v36 = vadd.f32 %v2949_v35, %v2621_v20  ;;  %v274_v37 = vpop.f32.mrb[7].mxu0  ;;  %3263 = vmatprep.subr.bf16.mxu1 %v3554_v61 }
  0xf9   :  { %v275_v38 = vadd.f32 %v2621_v20, %v274_v37 }
  0xfa   :  { %v321_v39 = vpack.c.bf16 %v283_v36, %v280_v32 }
  0xfb   :  { %v320_v40 = vpack.c.bf16 %v275_v38, %v272_v34  ;;  %v118_v34 = vld [vmem:[%s4799_s0 + $0x18] sm:$0xff] }
  0xfd   :  { %v2952_v41 = vpop.f32.mrb[8].mxu0  ;;  %2966 = vmatprep.mubr.msk.bf16.mxu1 %vm349_vm3, %v320_v40  ;;  %2986 = vmatprep.mubr.msk.bf16.mxu0 %vm349_vm3, %v320_v40  ;;  %v116_v40 = vld [vmem:[%s4799_s0 + $0x8] sm:$0xff] }
  0xfe   :  { %v296_v42 = vadd.f32 %v2952_v41, %v2621_v20  ;;  %v287_v43 = vpop.f32.mrb[9].mxu0  ;;  %2967 = vmatmul.mubr.msk.bf16.gmra.mrb[4].mxu1 %vm349_vm3, %v321_v39  ;;  %2987 = vmatmul.mubr.msk.bf16.gmra.mrb[20].mxu0 %vm349_vm3, %v321_v39 }
  0xff   :  { %v288_v44 = vadd.f32 %v2621_v20, %v287_v43  ;;  %v2953_v45 = vpop.f32.mrb[10].mxu0 }
 0x100   :  { %v299_v46 = vadd.f32 %v2953_v45, %v2621_v20  ;;  %v290_v47 = vpop.f32.mrb[11].mxu0 }
 0x101   :  { %v291_v48 = vadd.f32 %v2621_v20, %v290_v47  ;;  %v121_v47 = vld [vmem:[%s4799_s0 + $0x30] sm:$0xff] }
 0x102   :  { %v323_v49 = vpack.c.bf16 %v299_v46, %v296_v42 }
 0x103   :  { %v322_v50 = vpack.c.bf16 %v291_v48, %v288_v44 }
 0x105   :  { %v2956_v51 = vpop.f32.mrb[12].mxu0  ;;  %2970 = vmatprep.mubr.msk.bf16.mxu1 %vm349_vm3, %v322_v50  ;;  %2990 = vmatprep.mubr.msk.bf16.mxu0 %vm349_vm3, %v322_v50 }
 0x106   :  { %v312_v52 = vadd.f32 %v2956_v51, %v2621_v20  ;;  %v303_v53 = vpop.f32.mrb[13].mxu0  ;;  %2971 = vmatmul.mubr.msk.bf16.gmra.mrb[8].mxu1 %vm349_vm3, %v323_v49  ;;  %2991 = vmatmul.mubr.msk.bf16.gmra.mrb[24].mxu0 %vm349_vm3, %v323_v49 }
 0x107   :  { %v304_v54 = vadd.f32 %v2621_v20, %v303_v53  ;;  %v2957_v55 = vpop.f32.mrb[14].mxu0  ;;  %v119_v53 = vld [vmem:[%s4799_s0 + $0x20] sm:$0xff] }
 0x108   :  { %v315_v56 = vadd.f32 %v2957_v55, %v2621_v20  ;;  %v306_v57 = vpop.f32.mrb[15].mxu0 }
 0x109   :  { %v307_v58 = vadd.f32 %v2621_v20, %v306_v57  ;;  %v117_v20 = vld [vmem:[%s4799_s0 + $0x10] sm:$0xff] }
 0x10a   :  { %v325_v59 = vpack.c.bf16 %v315_v56, %v312_v52 }
 0x10b   :  { %v324_v60 = vpack.c.bf16 %v307_v58, %v304_v54 }
 0x10d   :  { %2974 = vmatprep.mubr.msk.bf16.mxu1 %vm349_vm3, %v324_v60  ;;  %2994 = vmatprep.mubr.msk.bf16.mxu0 %vm349_vm3, %v324_v60 }
 0x10e   :  { %2975 = vmatmul.mubr.msk.bf16.gmra.mrb[12].mxu1 %vm349_vm3, %v325_v59  ;;  %2995 = vmatmul.mubr.msk.bf16.gmra.mrb[28].mxu0 %vm349_vm3, %v325_v59 }
 0x10f   :  { %3032 = vmatprep.mubr.msk.bf16.mxu0 %vm3556_vm4, %v3555_v62 }
 0x1c9   :  { %v2964_v0 = vpop.f32.mrb[0].mxu1  ;;  %v2984_v1 = vpop.f32.mrb[16].mxu0 }
 0x1ca   :  { %v417_v2 = vadd.f32 %v2964_v0, %v3778_v63  ;;  %v408_v4 = vpop.f32.mrb[1].mxu1  ;;  %v576_v5 = vpop.f32.mrb[17].mxu0  ;;  %v585_v18 = vadd.f32 %v2984_v1, %v3785_v10  ;;  %v122_v1 = vld [vmem:[%s4799_s0 + $0x38] sm:$0xff] }
 0x1cb   :  { %v409_v6 = vadd.f32 %v3778_v63, %v408_v4  ;;  %v2965_v7 = vpop.f32.mrb[2].mxu1  ;;  %v2985_v8 = vpop.f32.mrb[18].mxu0  ;;  %v577_v21 = vadd.f32 %v3785_v10, %v576_v5 }
 0x1cc   :  { %v473_v9 = vmul.f32 0.5, %v417_v2  ;;  %v420_v11 = vadd.f32 %v2965_v7, %v3778_v63  ;;  %v411_v12 = vpop.f32.mrb[3].mxu1  ;;  %v579_v13 = vpop.f32.mrb[19].mxu0  ;;  %v588_v27 = vadd.f32 %v2985_v8, %v3785_v10  ;;  %v641_v32 = vmul.f32 %v585_v18, %v117_v20  ;;  %v120_v20 = vld [vmem:[%s4799_s0 + $0x28] sm:$0xff] }
 0x1cd   :  { %v471_v14 = vmul.f32 0.5, %v409_v6  ;;  %v412_v17 = vadd.f32 %v3778_v63, %v411_v12  ;;  %v3799_v33 = vmul.f32 %v585_v18, %v585_v18  ;;  %v580_v35 = vadd.f32 %v3785_v10, %v579_v13 }
 0x1ce   :  { %v491_v15 = vmul.f32 1.442695, %v473_v9  ;;  %v474_v16 = vmul.f32 0.5, %v420_v11  ;;  %v639_v39 = vmul.f32 %v577_v21, %v115_v24  ;;  %v3810_v45 = vmul.f32 %v577_v21, %v577_v21 }
 0x1cf   :  { %v487_v19 = vmul.f32 1.442695, %v471_v14  ;;  %v472_v23 = vmul.f32 0.5, %v412_v17  ;;  %v642_v50 = vmul.f32 %v588_v27, %v118_v34  ;;  %v3817_v51 = vmul.f32 %v588_v27, %v588_v27 }
 0x1d0   :  { %3390 = vpow2.f32 %v491_v15  ;;  %v493_v22 = vmul.f32 1.442695, %v474_v16  ;;  %v640_v55 = vmul.f32 %v580_v35, %v116_v40  ;;  %v3824_v59 = vmul.f32 %v580_v35, %v580_v35 }
 0x1d1   :  { %3392 = vpow2.f32 %v487_v19  ;;  %v2968_v25 = vpop.f32.mrb[4].mxu1  ;;  %v2988_v26 = vpop.f32.mrb[20].mxu0  ;;  %v489_v28 = vmul.f32 1.442695, %v472_v23 }
 0x1d2   :  { %3394 = vpow2.f32 %v493_v22  ;;  %v433_v29 = vadd.f32 %v2968_v25, %v3778_v63  ;;  %v424_v30 = vpop.f32.mrb[5].mxu1  ;;  %v592_v31 = vpop.f32.mrb[21].mxu0  ;;  %v601_v42 = vadd.f32 %v2988_v26, %v3785_v10 }
 0x1d3   :  { %v425_v36 = vadd.f32 %v3778_v63, %v424_v30  ;;  %v2969_v37 = vpop.f32.mrb[6].mxu1  ;;  %v2989_v38 = vpop.f32.mrb[22].mxu0  ;;  %3396 = vpow2.f32 %v489_v28  ;;  %v593_v49 = vadd.f32 %v3785_v10, %v592_v31 }
 0x1d4   :  { %v477_v41 = vmul.f32 0.5, %v433_v29  ;;  %v427_v43 = vpop.f32.mrb[7].mxu1  ;;  %v595_v44 = vpop.f32.mrb[23].mxu0  ;;  %v436_v48 = vadd.f32 %v2969_v37, %v3778_v63  ;;  %v604_v58 = vadd.f32 %v2989_v38, %v3785_v10  ;;  %v3826_v60 = vmul.f32 %v601_v42, %v121_v47 }
 0x1d5   :  { %v475_v46 = vmul.f32 0.5, %v425_v36  ;;  %v428_v54 = vadd.f32 %v3778_v63, %v427_v43  ;;  %v3831_v2 = vmul.f32 %v601_v42, %v601_v42  ;;  %v3833_v5 = vmul.f32 %v593_v49, %v119_v53 }
 0x1d6   :  { %v499_v52 = vmul.f32 1.442695, %v477_v41  ;;  %v478_v57 = vmul.f32 0.5, %v436_v48  ;;  %v3835_v9 = vmul.f32 %v593_v49, %v593_v49  ;;  %v3838_v12 = vadd.f32 %v3785_v10, %v595_v44 }
 0x1d7   :  { %v495_v56 = vmul.f32 1.442695, %v475_v46  ;;  %v476_v0 = vmul.f32 0.5, %v428_v54  ;;  %v3843_v19 = vmul.f32 %v604_v58, %v122_v1  ;;  %v3850_v26 = vmul.f32 %v604_v58, %v604_v58 }
 0x1d8   :  { %3398 = vpow2.f32 %v499_v52  ;;  %v501_v4 = vmul.f32 1.442695, %v478_v57  ;;  %v644_v35 = vmul.f32 %v3838_v12, %v120_v20 }
 0x1d9   :  { %3400 = vpow2.f32 %v495_v56  ;;  %v2972_v6 = vpop.f32.mrb[8].mxu1  ;;  %v2992_v7 = vpop.f32.mrb[24].mxu0  ;;  %v497_v11 = vmul.f32 1.442695, %v476_v0 }
 0x1da   :  { %v3391_v8 = vpop.eup %3390  ;;  %v449_v13 = vadd.f32 %v2972_v6, %v3778_v63  ;;  %v440_v14 = vpop.f32.mrb[9].mxu1  ;;  %3402 = vpow2.f32 %v501_v4  ;;  %v3858_v40 = vadd.f32 %v2992_v7, %v3785_v10  ;;  %v125_v6 = vld [vmem:[%s4799_s0 + $0x50] sm:$0xff] }
 0x1db   :  { %v3841_v15 = vpop.f32.mrb[25].mxu0  ;;  %v3393_v16 = vpop.eup %3392  ;;  %v657_v17 = vadd.f32 %v3391_v8, %v641_v32  ;;  %v999_v18 = vmul.f32 1.442695, %v3391_v8  ;;  %3404 = vpow2.f32 %v497_v11  ;;  %v965_v29 = vsub.f32 0.0, %v3391_v8 }
 0x1dc   :  { %v2973_v21 = vpop.f32.mrb[10].mxu1  ;;  %v3848_v22 = vpop.f32.mrb[26].mxu0  ;;  %v655_v24 = vadd.f32 %v3393_v16, %v639_v39  ;;  %v995_v25 = vmul.f32 1.442695, %v3393_v16  ;;  %v963_v30 = vsub.f32 0.0, %v3393_v16  ;;  %v481_v36 = vmul.f32 0.5, %v449_v13 }
 0x1dd   :  { %v3395_v23 = vpop.eup %3394  ;;  %v443_v27 = vpop.f32.mrb[11].mxu1  ;;  %3406 = vpow2.f32 %v999_v18  ;;  %v441_v43 = vadd.f32 %v3778_v63, %v440_v14  ;;  %v2675_v44 = vadd.f32 -1.0, %v965_v29  ;;  %v452_v54 = vadd.f32 %v2973_v21, %v3778_v63 }
 0x1de   :  { %v3852_v28 = vpop.f32.mrb[27].mxu0  ;;  %v658_v31 = vadd.f32 %v3395_v23, %v642_v50  ;;  %v3397_v32 = vpop.eup %3396  ;;  %3408 = vpow2.f32 %v995_v25  ;;  %v1001_v34 = vmul.f32 1.442695, %v3395_v23  ;;  %v966_v38 = vsub.f32 0.0, %v3395_v23 }
 0x1df   :  { %v656_v39 = vadd.f32 %v3397_v32, %v640_v55  ;;  %v997_v41 = vmul.f32 1.442695, %v3397_v32  ;;  %v507_v42 = vmul.f32 1.442695, %v481_v36  ;;  %v2673_v46 = vadd.f32 -1.0, %v963_v30 }
 0x1e0   :  { %v3855_v37 = vpack.c.bf16 %v658_v31, %v657_v17  ;;  %3410 = vpow2.f32 %v1001_v34  ;;  %v964_v48 = vsub.f32 0.0, %v3397_v32  ;;  %v479_v53 = vmul.f32 0.5, %v441_v43 }
 0x1e1   :  { %v3861_v47 = vpack.c.bf16 %v656_v39, %v655_v24  ;;  %v2976_v49 = vpop.f32.mrb[12].mxu1  ;;  %v3863_v50 = vpop.f32.mrb[28].mxu0  ;;  %3412 = vpow2.f32 %v997_v41  ;;  %v444_v55 = vadd.f32 %v3778_v63, %v443_v27  ;;  %v2676_v0 = vadd.f32 -1.0, %v966_v38 }
 0x1e2   :  { %v3399_v52 = vpop.eup %3398  ;;  %v456_v56 = vpop.f32.mrb[13].mxu1  ;;  %3414 = vpow2.f32 %v507_v42  ;;  %v503_v16 = vmul.f32 1.442695, %v479_v53  ;;  %v2674_v18 = vadd.f32 -1.0, %v964_v48  ;;  %v465_v21 = vadd.f32 %v2976_v49, %v3778_v63 }
 0x1e3   :  { %v3867_v57 = vpop.f32.mrb[29].mxu0  ;;  %v3401_v58 = vpop.eup %3400  ;;  %v661_v1 = vadd.f32 %v3399_v52, %v3826_v60  ;;  %v1007_v4 = vmul.f32 1.442695, %v3399_v52  ;;  %3000 = vmatprep.mubr.msk.bf16.mxu1 %vm687_vm5, %v3861_v47  ;;  %v969_v11 = vsub.f32 0.0, %v3399_v52  ;;  %v480_v27 = vmul.f32 0.5, %v444_v55 }
 0x1e4   :  { %v2977_v7 = vpop.f32.mrb[14].mxu1  ;;  %v3875_v8 = vpop.f32.mrb[30].mxu0  ;;  %v659_v13 = vadd.f32 %v3401_v58, %v3833_v5  ;;  %v1003_v14 = vmul.f32 1.442695, %v3401_v58  ;;  %3001 = vmatmul.mubr.msk.bf16.vlgmr.msra.gmra.mrb[16].mxu1 %vm687_vm5, %v3855_v37  ;;  %v967_v20 = vsub.f32 0.0, %v3401_v58  ;;  %v482_v5 = vmul.f32 0.5, %v452_v54 }
 0x1e5   :  { %v3880_v60 = vpop.f32.mrb[15].mxu1  ;;  %v3403_v17 = vpop.eup %3402  ;;  %3416 = vpow2.f32 %v1007_v4  ;;  %v649_v34 = vmul.f32 %v3858_v40, %v125_v6  ;;  %v2679_v39 = vadd.f32 -1.0, %v969_v11  ;;  %v505_v52 = vmul.f32 1.442695, %v480_v27 }
 0x1e6   :  { %v3883_v23 = vpop.f32.mrb[31].mxu0  ;;  %v3405_v24 = vpop.eup %3404  ;;  %3418 = vpow2.f32 %v1003_v14  ;;  %v662_v25 = vadd.f32 %v3403_v17, %v3843_v19  ;;  %v1009_v30 = vmul.f32 1.442695, %v3403_v17  ;;  %v2677_v43 = vadd.f32 -1.0, %v967_v20 }
 0x1e7   :  { %v3407_v29 = vpop.eup %3406  ;;  %v660_v31 = vadd.f32 %v3405_v24, %v644_v35  ;;  %v1005_v32 = vmul.f32 1.442695, %v3405_v24  ;;  %3420 = vpow2.f32 %v503_v16  ;;  %v509_v35 = vmul.f32 1.442695, %v482_v5 }
 0x1e8   :  { %v3409_v36 = vpop.eup %3408  ;;  %v1029_v38 = vadd.f32 %v3407_v29, %v2675_v44  ;;  %v3887_v41 = vpack.c.bf16 %v662_v25, %v661_v1  ;;  %3422 = vpow2.f32 %v1009_v30  ;;  %v485_v44 = vmul.f32 0.5, %v465_v21 }
 0x1e9   :  { %v1027_v42 = vadd.f32 %v3409_v36, %v2673_v46  ;;  %v3889_v48 = vpack.c.bf16 %v660_v31, %v659_v13  ;;  %3424 = vpow2.f32 %v1005_v32  ;;  %v457_v55 = vadd.f32 %v3778_v63, %v456_v56 }
 0x1ea   :  { %v3411_v19 = vpop.eup %3410  ;;  %v3892_v49 = vadd.f32 %v3799_v33, %v1029_v38  ;;  %v970_v58 = vsub.f32 0.0, %v3403_v17  ;;  %3426 = vpow2.f32 %v509_v35  ;;  %v468_v1 = vadd.f32 %v2977_v7, %v3778_v63  ;;  %v123_v7 = vld [vmem:[%s4799_s0 + $0x40] sm:$0xff] }
 0x1eb   :  { %v1059_v53 = vadd.f32 %v3810_v45, %v1027_v42  ;;  %v1030_v54 = vadd.f32 %v3411_v19, %v2676_v0  ;;  %3004 = vmatprep.mubr.msk.bf16.mxu1 %vm687_vm5, %v3889_v48  ;;  %v3413_v46 = vpop.eup %3412  ;;  %v3901_v33 = vadd.f32 %v3785_v10, %v3841_v15  ;;  %3428 = vpow2.f32 %v505_v52  ;;  %v124_v52 = vld [vmem:[%s4799_s0 + $0x48] sm:$0xff] }
 0x1ec   :  { %3005 = vmatmul.mubr.msk.bf16.gmra.mrb[20].mxu1 %vm687_vm5, %v3887_v41  ;;  %v3415_v45 = vpop.eup %3414  ;;  %v1028_v56 = vadd.f32 %v3413_v46, %v2674_v18  ;;  %v515_v4 = vmul.f32 1.442695, %v485_v44  ;;  %v968_v6 = vsub.f32 0.0, %v3405_v24  ;;  %v483_v11 = vmul.f32 0.5, %v457_v55 }
 0x1ed   :  { %v3906_v0 = vadd.f32 %v3817_v51, %v1030_v54  ;;  %v665_v13 = vadd.f32 %v3415_v45, %v649_v34  ;;  %v1015_v14 = vmul.f32 1.442695, %v3415_v45  ;;  %v486_v51 = vmul.f32 0.5, %v468_v1 }
 0x1ee   :  { %v1060_v17 = vadd.f32 %v3824_v59, %v1028_v56  ;;  %3430 = vpow2.f32 %v515_v4  ;;  %v2680_v21 = vadd.f32 -1.0, %v970_v58  ;;  %v511_v25 = vmul.f32 1.442695, %v483_v11  ;;  %v129_v56 = vld [vmem:[%s4799_s0 + $0x70] sm:$0xff] }
 0x1ef   :  { %v3417_v15 = vpop.eup %3416  ;;  %v3268_v16 = vpack.c.bf16 %v3906_v0, %v3892_v49  ;;  %3432 = vpow2.f32 %v1015_v14  ;;  %v517_v29 = vmul.f32 1.442695, %v486_v51  ;;  %v647_v30 = vmul.f32 %v3901_v33, %v123_v7 }
 0x1f0   :  { %v3419_v20 = vpop.eup %3418  ;;  %v1033_v18 = vadd.f32 %v3417_v15, %v2679_v39  ;;  %v3264_v5 = vpack.c.bf16 %v1060_v17, %v1059_v53  ;;  %v2678_v32 = vadd.f32 -1.0, %v968_v6  ;;  %3434 = vpow2.f32 %v511_v25 }
 0x1f1   :  { %v1031_v27 = vadd.f32 %v3419_v20, %v2677_v43  ;;  %v3421_v31 = vpop.eup %3420  ;;  %v460_v34 = vadd.f32 %v3778_v63, %v3880_v60  ;;  %v973_v39 = vsub.f32 0.0, %v3415_v45  ;;  %3436 = vpow2.f32 %v517_v29  ;;  %v126_v43 = vld [vmem:[%s4799_s0 + $0x58] sm:$0xff] }
 0x1f2   :  { %v3922_v59 = vadd.f32 %v3831_v2, %v1033_v18  ;;  %v3423_v36 = vpop.eup %3422  ;;  %v663_v42 = vadd.f32 %v3421_v31, %v647_v30  ;;  %3266 = vmatpush3.bf16.xpose.msk.msra.mxu1 %vm3916_vm6, %v3264_v5  ;;  %v1011_v49 = vmul.f32 1.442695, %v3421_v31  ;;  %v3936_v63 = vadd.f32 %v3848_v22, %v3785_v10 }
 0x1f3   :  { %v3927_v38 = vadd.f32 %v3835_v9, %v1031_v27  ;;  %v3425_v2 = vpop.eup %3424  ;;  %v1034_v19 = vadd.f32 %v3423_v36, %v2680_v21  ;;  %v484_v35 = vmul.f32 0.5, %v460_v34  ;;  %3267 = vmatprep.subr.bf16.mxu1 %v3554_v61  ;;  %v1048_v60 = vmul.f32 %v3838_v12, %v3838_v12 }
 0x1f4   :  { %v1032_v9 = vadd.f32 %v3425_v2, %v2678_v32  ;;  %v3946_v53 = vadd.f32 %v3785_v10, %v3852_v28  ;;  %v3427_v54 = vpop.eup %3426  ;;  %3438 = vpow2.f32 %v1011_v49  ;;  %v650_v55 = vmul.f32 %v3936_v63, %v126_v43 }
 0x1f5   :  { %v3949_v44 = vadd.f32 %v3850_v26, %v1034_v19  ;;  %v513_v22 = vmul.f32 1.442695, %v484_v35  ;;  %v3429_v46 = vpop.eup %3428  ;;  %v2683_v1 = vadd.f32 -1.0, %v973_v39  ;;  %v1017_v12 = vmul.f32 1.442695, %v3427_v54 }
 0x1f6   :  { %v1064_v58 = vadd.f32 %v1048_v60, %v1032_v9  ;;  %v3954_v45 = vadd.f32 %v3863_v50, %v3785_v10  ;;  %v666_v0 = vadd.f32 %v3427_v54, %v650_v55  ;;  %v648_v26 = vmul.f32 %v3946_v53, %v124_v52 }
 0x1f7   :  { %v3276_v28 = vpack.c.bf16 %v3949_v44, %v3922_v59  ;;  %3440 = vpow2.f32 %v513_v22  ;;  %v971_v11 = vsub.f32 0.0, %v3421_v31  ;;  %v1013_v15 = vmul.f32 1.442695, %v3429_v46  ;;  %v130_v31 = vld [vmem:[%s4799_s0 + $0x78] sm:$0xff]  ;;  %v1197_v59 = vld [vmem:[%s4765_s15] sm:$0xf] }
 0x1f8   :  { %v3431_v4 = vpop.eup %3430  ;;  %v3272_v6 = vpack.c.bf16 %v1064_v58, %v3927_v38  ;;  %3442 = vpow2.f32 %v1017_v12  ;;  %v3963_v7 = vpack.c.bf16 %v666_v0, %v665_v13  ;;  %v664_v50 = vadd.f32 %v3429_v46, %v648_v26  ;;  %v127_v13 = vld [vmem:[%s4799_s0 + $0x60] sm:$0xff]  ;;  %s4803_s15 = sld [smem:[#allocation9_spill]] }
 0x1f9   :  { %v3433_v14 = vpop.eup %3432  ;;  %v1053_v51 = vmul.f32 %v3858_v40, %v3858_v40  ;;  %v653_v20 = vmul.f32 %v3954_v45, %v129_v56  ;;  %v974_v21 = vsub.f32 0.0, %v3427_v54  ;;  %3444 = vpow2.f32 %v1013_v15 }
 0x1fa   :  { %v1037_v17 = vadd.f32 %v3433_v14, %v2683_v1  ;;  %3270 = vmatpush3.bf16.xpose.msk.msra.mxu1 %vm3916_vm6, %v3268_v16  ;;  %v3435_v18 = vpop.eup %3434  ;;  %v3970_v25 = vpack.c.bf16 %v664_v50, %v663_v42  ;;  %v1023_v5 = vmul.f32 1.442695, %v3431_v4  ;;  %v2681_v40 = vadd.f32 -1.0, %v971_v11 }
 0x1fb   :  { %3271 = vmatprep.subr.bf16.mxu1 %v3554_v61  ;;  %v3437_v27 = vpop.eup %3436  ;;  %v669_v30 = vadd.f32 %v3431_v4, %v653_v20  ;;  %v625_v16 = vadd.f32 %v3785_v10, %v3867_v57  ;;  %v1019_v32 = vmul.f32 1.442695, %v3435_v18  ;;  %v636_v34 = vadd.f32 %v3875_v8, %v3785_v10  ;;  %v128_v8 = vld [vmem:[%s4799_s0 + $0x68] sm:$0xff] }
 0x1fc   :  { %v3976_v29 = vadd.f32 %v1053_v51, %v1037_v17  ;;  %3446 = vpow2.f32 %v1023_v5  ;;  %3008 = vmatprep.mubr.msk.bf16.mxu1 %vm687_vm5, %v3970_v25  ;;  %v972_v36 = vsub.f32 0.0, %v3429_v46  ;;  %v1025_v39 = vmul.f32 1.442695, %v3437_v27 }
 0x1fd   :  { %v651_v38 = vmul.f32 %v625_v16, %v127_v13  ;;  %3009 = vmatmul.mubr.msk.bf16.gmra.mrb[24].mxu1 %vm687_vm5, %v3963_v7  ;;  %v1051_v57 = vmul.f32 %v3901_v33, %v3901_v33  ;;  %v2684_v43 = vadd.f32 -1.0, %v974_v21  ;;  %3448 = vpow2.f32 %v1019_v32 }
 0x1fe   :  { %v3439_v42 = vpop.eup %3438  ;;  %v654_v2 = vmul.f32 %v636_v34, %v130_v31  ;;  %v977_v49 = vsub.f32 0.0, %v3431_v4  ;;  %3450 = vpow2.f32 %v1025_v39  ;;  %v1054_v60 = vmul.f32 %v3936_v63, %v3936_v63 }
 0x1ff   :  { %v1035_v19 = vadd.f32 %v3439_v42, %v2681_v40  ;;  %v667_v35 = vadd.f32 %v3435_v18, %v651_v38  ;;  %v628_v54 = vadd.f32 %v3785_v10, %v3883_v23  ;;  %v2682_v55 = vadd.f32 -1.0, %v972_v36 }
 0x200   :  { %v670_v52 = vadd.f32 %v3437_v27, %v654_v2  ;;  %v975_v46 = vsub.f32 0.0, %v3435_v18  ;;  %v978_v0 = vsub.f32 0.0, %v3437_v27  ;;  %v2687_v56 = vadd.f32 -1.0, %v977_v49  ;;  %v105_v2 = vld [vmem:[%s4802_s10 + $0x40] sm:$0xff] }
 0x201   :  { %v3441_v9 = vpop.eup %3440  ;;  %v1067_v22 = vadd.f32 %v1051_v57, %v1035_v19  ;;  %v652_v26 = vmul.f32 %v628_v54, %v128_v8  ;;  %v1052_v23 = vmul.f32 %v3946_v53, %v3946_v53  ;;  %v1057_v21 = vmul.f32 %v3954_v45, %v3954_v45  ;;  %v4070_v49 = vld [vmem:[%s4762_s12] ss:$0 sm:$0xff] }
 0x202   :  { %v3443_v33 = vpop.eup %3442  ;;  %v1021_v58 = vmul.f32 1.442695, %v3441_v9  ;;  %3274 = vmatpush3.bf16.xpose.msk.msra.mxu1 %vm3916_vm6, %v3272_v6  ;;  %v678_v12 = vpack.c.bf16 %v670_v52, %v669_v30  ;;  %v2685_v14 = vadd.f32 -1.0, %v975_v46  ;;  %v2688_v6 = vadd.f32 -1.0, %v978_v0  ;;  %v109_v46 = vld [vmem:[%s4802_s10 + $0x60] sm:$0xff] }
 0x203   :  { %v1038_v1 = vadd.f32 %v3443_v33, %v2684_v43  ;;  %3275 = vmatprep.subr.bf16.mxu1 %v3554_v61  ;;  %v3445_v63 = vpop.eup %3444  ;;  %v668_v11 = vadd.f32 %v3441_v9, %v652_v26  ;;  %v976_v51 = vsub.f32 0.0, %v3441_v9  ;;  %v1055_v53 = vmul.f32 %v625_v16, %v625_v16 }
 0x204   :  { %3452 = vpow2.f32 %v1021_v58  ;;  %v1036_v10 = vadd.f32 %v3445_v63, %v2682_v55  ;;  %v1056_v42 = vmul.f32 %v628_v54, %v628_v54  ;;  %v1206_v44 = vsel %vm712_vm2, %v1197_v59, 0 }
 0x205   :  { %v1070_v4 = vadd.f32 %v1054_v60, %v1038_v1  ;;  %v677_v17 = vpack.c.bf16 %v668_v11, %v667_v35  ;;  %v2686_v32 = vadd.f32 -1.0, %v976_v51  ;;  %vm1836_vm11 = vcmp.eq.f32.partialorder %v105_v2, 0.0  ;;  %v107_v35 = vld [vmem:[%s4802_s10 + $0x50] sm:$0xff] }
 0x206   :  { %v3447_v50 = vpop.eup %3446  ;;  %v1068_v20 = vadd.f32 %v1052_v23, %v1036_v10  ;;  %v1852_v52 = vsel %vm1836_vm11, 1, %v3553_v3  ;;  %vm1838_vm12 = vcmp.eq.f32.partialorder %v107_v35, 0.0  ;;  %v99_v1 = vld [vmem:[%s4802_s10 + $0x10] sm:$0xff]  ;;  %vm1840_vm14 = vcmp.eq.f32.partialorder %v109_v46, 0.0 }
 0x207   :  { %v3284_v15 = vpack.c.bf16 %v1070_v4, %v3976_v29  ;;  %v1041_v18 = vadd.f32 %v3447_v50, %v2687_v56  ;;  %v3449_v5 = vpop.eup %3448  ;;  %3012 = vmatprep.mubr.msk.bf16.mxu1 %vm687_vm5, %v677_v17  ;;  %v1058_v29 = vmul.f32 %v636_v34, %v636_v34  ;;  %v1854_v26 = vsel %vm1838_vm12, 1, %v3553_v3  ;;  %v111_v10 = vld [vmem:[%s4802_s10 + $0x70] sm:$0xff]  ;;  %v100_v50 = vld [vmem:[%s4802_s10 + $0x18] sm:$0xff] }
 0x208   :  { %v3451_v13 = vpop.eup %3450  ;;  %v3280_v27 = vpack.c.bf16 %v1068_v20, %v1067_v22  ;;  %v1039_v30 = vadd.f32 %v3449_v5, %v2685_v14  ;;  %3013 = vmatmul.mubr.msk.bf16.gmra.mrb[28].mxu1 %vm687_vm5, %v678_v12  ;;  %vm1830_vm13 = vcmp.eq.f32.partialorder %v99_v1, 0.0  ;;  %v1856_v51 = vsel %vm1840_vm14, 1, %v3553_v3 }
 0x209   :  { %v1073_v40 = vadd.f32 %v1057_v21, %v1041_v18  ;;  %v1042_v31 = vadd.f32 %v3451_v13, %v2688_v6  ;;  %3068 = vmatprep.mubr.msk.f32.mxu1 %vm3556_vm4, %v3555_v62  ;;  %v1846_v4 = vsel %vm1830_vm13, 1, %v3553_v3  ;;  %vm1831_vm15 = vcmp.eq.f32.partialorder %v100_v50, 0.0 }
 0x20a   :  { %3278 = vmatpush3.bf16.xpose.msk.msra.mxu1 %vm3916_vm6, %v3276_v28  ;;  %v1071_v45 = vadd.f32 %v1055_v53, %v1039_v30  ;;  %v3557_v28 = vmov 1.0   ;;  %1867 = vperm.xlu1 %3373, %v1846_v4   ;;  %vm1842_vm1 = vcmp.eq.f32.partialorder %v111_v10, 0.0  ;;  %v1847_v5 = vsel %vm1831_vm15, 1, %v3553_v3  ;;  %v102_v30 = vld [vmem:[%s4802_s10 + $0x28] sm:$0xff] }
 0x20b   :  { %3279 = vmatprep.subr.bf16.mxu1 %v3554_v61  ;;  %v1074_v36 = vadd.f32 %v1058_v29, %v1042_v31  ;;  %v1858_v29 = vsel %vm1842_vm1, 1, %v3553_v3 }
 0x20d   :  { %v3292_v16 = vpack.c.bf16 %v1074_v36, %v1073_v40 }
 0x20e   :  { %v3453_v38 = vpop.eup %3452  ;;  %1870 = vperm.xlu1 %3373, %v1847_v5   ;;  %v3533_v5 = vld [vmem:[%s4794_s27 + $0x8] sm:$0xff]  }
 0x20f   :  { %v1040_v39 = vadd.f32 %v3453_v38, %v2686_v32 }
 0x211   :  { %v1072_v57 = vadd.f32 %v1056_v42, %v1040_v39  ;;  %v104_v39 = vld [vmem:[%s4802_s10 + $0x38] sm:$0xff]  ;;  %v838_v42 = vld [vmem:[#allocation2] sm:$0x1] }
 0x212   :  { %3282 = vmatpush3.bf16.xpose.msk.msra.mxu1 %vm3916_vm6, %v3280_v27 }
 0x213   :  { %v3288_v34 = vpack.c.bf16 %v1072_v57, %v1071_v45  ;;  %3283 = vmatprep.subr.bf16.mxu1 %v3554_v61 }
 0x21a   :  { %3286 = vmatpush3.bf16.xpose.msk.msra.mxu1 %vm3916_vm6, %v3284_v15  ;;  %v3389_v15 = vld [vmem:[%s4769_s19] sm:$0xff]  }
 0x21b   :  { %3287 = vmatprep.subr.bf16.mxu1 %v3554_v61 }
 0x222   :  { %3290 = vmatpush3.bf16.xpose.msk.msra.mxu1 %vm3916_vm6, %v3288_v34 }
 0x223   :  { %3291 = vmatprep.subr.bf16.mxu1 %v3554_v61 }
 0x22a   :  { %3294 = vmatpush3.bf16.xpose.msk.msra.mxu1 %vm3916_vm6, %v3292_v16 }
 0x22b   :  { %3352 = vmatprep.subr.msk.bf16.mxu1 %vm712_vm2, %v1197_v59  ;;  %v106_v59 = vld [vmem:[%s4802_s10 + $0x48] sm:$0xff] }
 0x231   :  { %3069 = vmatmul.mubr.msk.f32.vlgmr.msra.gmra.mrb[32].mxu1 %vm687_vm5, %v3557_v28 }
 0x232   :  { %3072 = vmatpush3.bf16.msra.mxu1 %v1206_v44  ;;  %3073 = vmatprep.mubr.msk.bf16.mxu1 %vm687_vm5, %v3861_v47  ;;  %v98_v47 = vld [vmem:[%s4802_s10 + $0x8] sm:$0xff] }
 0x233   :  { %vm1829_vm8 = vcmp.eq.f32.partialorder %v98_v47, 0.0  ;;  %3107 = vmatprep.subr.bf16.mxu1 %v3389_v15 }
 0x235   :  { %3074 = vmatmul.mubr.msk.bf16.vlgmr.msra.gmra.mrb[36].mxu1 %vm687_vm5, %v3855_v37  ;;  %v97_v37 = vld [vmem:[%s4802_s10] sm:$0xff] }
 0x236   :  { %3077 = vmatprep.mubr.msk.bf16.mxu1 %vm687_vm5, %v3889_v48  ;;  %vm1828_vm7 = vcmp.eq.f32.partialorder %v97_v37, 0.0  ;;  %v101_v48 = vld [vmem:[%s4802_s10 + $0x20] sm:$0xff]  ;;  %3108 = vmatpush3.bf16.msra.mxu1 %v3389_v15 }
 0x237   :  { %vm1832_vm9 = vcmp.eq.f32.partialorder %v101_v48, 0.0 }
 0x238   :  { %v1848_v43 = vsel %vm1832_vm9, 1, %v3553_v3  ;;  %vm1837_vm9 = vcmp.eq.f32.partialorder %v106_v59, 0.0 }
 0x239   :  { %v1853_v44 = vsel %vm1837_vm9, 1, %v3553_v3 }
 0x23d   :  { %3078 = vmatmul.mubr.msk.bf16.gmra.mrb[40].mxu1 %vm687_vm5, %v3887_v41  ;;  %v1844_v41 = vsel %vm1828_vm7, 1, %v3553_v3  ;;  %vm1833_vm7 = vcmp.eq.f32.partialorder %v102_v30, 0.0 }
 0x23e   :  { %3081 = vmatprep.mubr.msk.bf16.mxu1 %vm687_vm5, %v3970_v25  ;;  %1861 = vperm.xlu0 %3372, %v1844_v41   ;;  %v103_v25 = vld [vmem:[%s4802_s10 + $0x30] sm:$0xff]  ;;  %v1849_v36 = vsel %vm1833_vm7, 1, %v3553_v3 }
 0x23f   :  { %vm1834_vm10 = vcmp.eq.f32.partialorder %v103_v25, 0.0  ;;  %1876 = vperm.xlu1 %3373, %v1849_v36   ;;  %v3536_v36 = vld [vmem:[%s4794_s27 + $0x20] sm:$0xff]  }
 0x240   :  { %v1850_v19 = vsel %vm1834_vm10, 1, %v3553_v3  ;;  %vm1320_vm10 = vcmask 130048  }
 0x245   :  { %3082 = vmatmul.mubr.msk.bf16.gmra.mrb[44].mxu1 %vm687_vm5, %v3963_v7  ;;  %v1845_v7 = vsel %vm1829_vm8, 1, %v3553_v3  ;;  %vm1835_vm8 = vcmp.eq.f32.partialorder %v104_v39, 0.0 }
 0x246   :  { %3085 = vmatprep.mubr.msk.bf16.mxu1 %vm687_vm5, %v677_v17  ;;  %1864 = vperm.xlu0 %3372, %v1845_v7   ;;  %v1851_v34 = vsel %vm1835_vm8, 1, %v3553_v3 }
 0x247   :  { %1882 = vperm.xlu1 %3373, %v1851_v34  }
 0x24a   :  { %1873 = vperm.xlu0 %3372, %v1848_v43  }
 0x24b   :  { %1888 = vperm.xlu1 %3373, %v1853_v44   ;;  %v3537_v44 = vld [vmem:[%s4794_s27 + $0x28] sm:$0xff]  }
 0x24d   :  { %3086 = vmatmul.mubr.msk.bf16.gmra.mrb[48].mxu1 %vm687_vm5, %v678_v12 }
 0x24e   :  { %1879 = vperm.xlu0 %3372, %v1850_v19  }
 0x252   :  { %1885 = vperm.xlu0 %3372, %v1852_v52  }
 0x256   :  { %1891 = vperm.xlu0 %3372, %v1854_v26  }
 0x25a   :  { %1897 = vperm.xlu0 %3372, %v1856_v51   ;;  %v3532_v51 = vld [vmem:[%s4794_s27] sm:$0xff]  }
 0x25e   :  { %1903 = vperm.xlu0 %3372, %v1858_v29  }
 0x262   :  { %841 = vperm.xlu0 %3372, %v838_v42  }
 0x2b7   :  { %v3002_v8 = vpop.f32.mrb[16].mxu1 }
 0x2b8   :  { %v759_v9 = vadd.f32 %v3002_v8, %v4070_v49  ;;  %v750_v60 = vpop.f32.mrb[17].mxu1 }
 0x2b9   :  { %v751_v54 = vadd.f32 %v4070_v49, %v750_v60  ;;  %v3003_v33 = vpop.f32.mrb[18].mxu1 }
 0x2ba   :  { %v762_v22 = vadd.f32 %v3003_v33, %v4070_v49  ;;  %v753_v55 = vpop.f32.mrb[19].mxu1  ;;  %v815_v12 = vmax.f32 %v759_v9, 0.0 }
 0x2bb   :  { %v754_v58 = vadd.f32 %v4070_v49, %v753_v55  ;;  %v813_v56 = vmax.f32 %v751_v54, 0.0 }
 0x2bc   :  { %v816_v0 = vmax.f32 %v762_v22, 0.0 }
 0x2bd   :  { %v814_v63 = vmax.f32 %v754_v58, 0.0 }
 0x2be   :  { %v831_v11 = vpack.c.bf16 %v816_v0, %v815_v12 }
 0x2bf   :  { %v830_v23 = vpack.c.bf16 %v814_v63, %v813_v56  ;;  %v3006_v14 = vpop.f32.mrb[20].mxu1 }
 0x2c0   :  { %v775_v6 = vadd.f32 %v3006_v14, %v4070_v49  ;;  %v766_v17 = vpop.f32.mrb[21].mxu1  ;;  %v855_v57 = vsel %vm349_vm3, %v831_v11, 0 }
 0x2c1   :  { %v767_v20 = vadd.f32 %v4070_v49, %v766_v17  ;;  %v3007_v18 = vpop.f32.mrb[22].mxu1  ;;  %v852_v21 = vsel %vm349_vm3, %v830_v23, 0  ;;  %v829_v17 = vld [vmem:[%s4763_s13] sm:$0x1] }
 0x2c2   :  { %v778_v13 = vadd.f32 %v3007_v18, %v4070_v49  ;;  %v769_v27 = vpop.f32.mrb[23].mxu1  ;;  %3017 = vmatpush3.bf16.xpose.msra.mxu0 %v852_v21  ;;  %v819_v53 = vmax.f32 %v775_v6, 0.0  ;;  %v4155_v21 = vld [vmem:[%s4766_s16] ss:$0 sm:$0xff] }
 0x2c3   :  { %v770_v40 = vadd.f32 %v4070_v49, %v769_v27  ;;  %3018 = vmatprep.subr.bf16.mxu0 %v3555_v62  ;;  %v817_v32 = vmax.f32 %v767_v20, 0.0  ;;  %v3534_v27 = vld [vmem:[%s4794_s27 + $0x10] sm:$0xff]  }
 0x2c4   :  { %v820_v31 = vmax.f32 %v778_v13, 0.0 }
 0x2c5   :  { %v818_v45 = vmax.f32 %v770_v40, 0.0 }
 0x2c6   :  { %v833_v38 = vpack.c.bf16 %v820_v31, %v819_v53 }
 0x2c7   :  { %v832_v16 = vpack.c.bf16 %v818_v45, %v817_v32  ;;  %v3535_v32 = vld [vmem:[%s4794_s27 + $0x18] sm:$0xff]  }
 0x2c8   :  { %v861_v54 = vsel %vm349_vm3, %v833_v38, 0 }
 0x2c9   :  { %v858_v37 = vsel %vm349_vm3, %v832_v16, 0 }
 0x2ca   :  { %3019 = vmatpush3.bf16.xpose.msra.mxu0 %v855_v57 }
 0x2cb   :  { %3020 = vmatprep.subr.bf16.mxu0 %v3555_v62 }
 0x2d0   :  { %v3010_v47 = vpop.f32.mrb[24].mxu1 }
 0x2d1   :  { %v791_v41 = vadd.f32 %v3010_v47, %v4070_v49  ;;  %v782_v48 = vpop.f32.mrb[25].mxu1  ;;  %v3538_v47 = vld [vmem:[%s4794_s27 + $0x30] sm:$0xff]  }
 0x2d2   :  { %3021 = vmatpush3.bf16.xpose.msra.mxu0 %v858_v37  ;;  %v783_v7 = vadd.f32 %v4070_v49, %v782_v48  ;;  %v3011_v25 = vpop.f32.mrb[26].mxu1 }
 0x2d3   :  { %3022 = vmatprep.subr.bf16.mxu0 %v3555_v62  ;;  %v794_v43 = vadd.f32 %v3011_v25, %v4070_v49  ;;  %v785_v2 = vpop.f32.mrb[27].mxu1  ;;  %v823_v35 = vmax.f32 %v791_v41, 0.0 }
 0x2d4   :  { %v786_v19 = vadd.f32 %v4070_v49, %v785_v2  ;;  %v821_v9 = vmax.f32 %v783_v7, 0.0 }
 0x2d5   :  { %v824_v8 = vmax.f32 %v794_v43, 0.0 }
 0x2d6   :  { %v822_v60 = vmax.f32 %v786_v19, 0.0 }
 0x2d7   :  { %v835_v52 = vpack.c.bf16 %v824_v8, %v823_v35  ;;  %v3539_v35 = vld [vmem:[%s4794_s27 + $0x38] sm:$0xff]  }
 0x2d8   :  { %v834_v33 = vpack.c.bf16 %v822_v60, %v821_v9 }
 0x2d9   :  { %v867_v50 = vsel %vm349_vm3, %v835_v52, 0 }
 0x2da   :  { %3023 = vmatpush3.bf16.xpose.msra.mxu0 %v861_v54  ;;  %v864_v56 = vsel %vm349_vm3, %v834_v33, 0 }
 0x2db   :  { %3024 = vmatprep.subr.bf16.mxu0 %v3555_v62  ;;  %v3014_v22 = vpop.f32.mrb[28].mxu1 }
 0x2dc   :  { %v807_v55 = vadd.f32 %v3014_v22, %v4070_v49  ;;  %v798_v46 = vpop.f32.mrb[29].mxu1 }
 0x2dd   :  { %v799_v58 = vadd.f32 %v4070_v49, %v798_v46  ;;  %v3015_v1 = vpop.f32.mrb[30].mxu1  ;;  %v108_v46 = vld [vmem:[%s4802_s10 + $0x58] sm:$0xff] }
 0x2de   :  { %v827_v12 = vmax.f32 %v807_v55, 0.0  ;;  %v810_v0 = vadd.f32 %v3015_v1, %v4070_v49  ;;  %v801_v26 = vpop.f32.mrb[31].mxu1  ;;  %v110_v1 = vld [vmem:[%s4802_s10 + $0x68] sm:$0xff] }
 0x2df   :  { %v825_v63 = vmax.f32 %v799_v58, 0.0  ;;  %v802_v4 = vadd.f32 %v4070_v49, %v801_v26  ;;  %v3388_v49 = vld [vmem:[%s4767_s17] sm:$0xff]   ;;  %vm1841_vm11 = vcmp.eq.f32.partialorder %v110_v1, 0.0 }
 0x2e0   :  { %v828_v11 = vmax.f32 %v810_v0, 0.0  ;;  %v112_v0 = vld [vmem:[%s4802_s10 + $0x78] sm:$0xff] }
 0x2e1   :  { %v826_v10 = vmax.f32 %v802_v4, 0.0  ;;  %vm1843_vm12 = vcmp.eq.f32.partialorder %v112_v0, 0.0 }
 0x2e2   :  { %3025 = vmatpush3.bf16.xpose.msra.mxu0 %v864_v56  ;;  %v837_v23 = vpack.c.bf16 %v828_v11, %v827_v12  ;;  %v1857_v12 = vsel %vm1841_vm11, 1, %v3553_v3  ;;  %v1859_v26 = vsel %vm1843_vm12, 1, %v3553_v3  ;;  %v1727_v56 = vld [vmem:[%s4772_s22] sm:$0xf] }
 0x2e3   :  { %3026 = vmatprep.subr.bf16.mxu0 %v3555_v62  ;;  %v836_v14 = vpack.c.bf16 %v826_v10, %v825_v63  ;;  %3354 = vmatprep.subr.msk.bf16.mxu1 %vm712_vm2, %v1727_v56  ;;  %v4247_v63 = vpop.permute.xlu0 %1861 }
 0x2e4   :  { %v873_v6 = vsel %vm349_vm3, %v837_v23, 0  ;;  %vm1908_vm1 = vcmp.eq.s32.totalorder %v4247_v63, 1 }
 0x2e5   :  { %v870_v15 = vsel %vm349_vm3, %v836_v14, 0 }
 0x2e7   :  { %v4249_v4 = vpop.permute.xlu0 %1864 }
 0x2e8   :  { %vm1909_vm8 = vcmp.eq.s32.totalorder %v4249_v4, 1 }
 0x2ea   :  { %3027 = vmatpush3.bf16.xpose.msra.mxu0 %v867_v50  ;;  %v844_v50 = vlaneseq }
 0x2eb   :  { %3028 = vmatprep.subr.bf16.mxu0 %v3555_v62  ;;  %v4251_v11 = vpop.permute.xlu0 %1873 }
 0x2ef   :  { %v4253_v10 = vpop.permute.xlu0 %1879 }
 0x2f0   :  { %vm1914_vm9 = vcmp.eq.s32.totalorder %v4253_v10, 1 }
 0x2f2   :  { %3029 = vmatpush3.bf16.xpose.msra.mxu0 %v870_v15 }
 0x2f3   :  { %3030 = vmatprep.subr.bf16.mxu0 %v3555_v62  ;;  %v4255_v23 = vpop.permute.xlu0 %1885 }
 0x2f7   :  { %v4257_v14 = vpop.permute.xlu0 %1891 }
 0x2f8   :  { %vm1918_vm12 = vcmp.eq.s32.totalorder %v4257_v14, 1 }
 0x2fa   :  { %3031 = vmatpush3.bf16.xpose.msra.mxu0 %v873_v6 }
 0x2fb   :  { %3089 = vmatprep.subr.bf16.mxu0 %v3388_v49 }
 0x301   :  { %3033 = vmatmul.mubr.msk.bf16.vlgmr.msra.gmra.mrb[32].mxu0 %vm349_vm3, %v829_v17  ;;  %vm1839_vm3 = vcmp.eq.f32.partialorder %v108_v46, 0.0 }
 0x302   :  { %3090 = vmatpush3.bf16.msra.mxu0 %v3388_v49  ;;  %3091 = vmatprep.mubr.msk.bf16.mxu0 %vm1320_vm10, %v3532_v51  ;;  %v1855_v58 = vsel %vm1839_vm3, 1, %v3553_v3  ;;  %v4259_v3 = vpop.permute.xlu0 %1897  ;;  %v4263_v49 = vshrl.u32 %v844_v50, 7  ;;  %v1729_v50 = vsel %vm712_vm2, %v1727_v56, 0 }
 0x303   :  { %1894 = vperm.xlu1 %3373, %v1855_v58  }
 0x304   :  { %v4150_v20 = vpop.f32.mrb[32].mxu1  ;;  %v846_v6 = vsub.s32 0, %v4263_v49 }
 0x305   :  { %v3070_v18 = vpop.f32.mrb[33].mxu1 }
 0x306   :  { %v4261_v15 = vpop.permute.xlu0 %1903 }
 0x307   :  { %1900 = vperm.xlu1 %3373, %v1857_v12  }
 0x308   :  { %v3075_v13 = vpop.f32.mrb[36].mxu1 }
 0x309   :  { %3092 = vmatmul.mubr.msk.bf16.vlgmr.msra.gmra.mrb[36].mxu0 %vm1320_vm10, %v3533_v5  ;;  %v4166_v40 = vadd.f32 %v3075_v13, %v4155_v21  ;;  %v4168_v30 = vpop.f32.mrb[37].mxu1 }
 0x30a   :  { %3095 = vmatprep.mubr.msk.bf16.mxu0 %vm1320_vm10, %v3534_v27  ;;  %v3076_v53 = vpop.f32.mrb[38].mxu1  ;;  %v842_v17 = vpop.permute.xlu0 %841  ;;  %v4286_v12 = vadd.f32 %v4155_v21, %v4168_v30 }
 0x30b   :  { %v4171_v31 = vadd.f32 %v3076_v53, %v4155_v21  ;;  %v4173_v29 = vpop.f32.mrb[39].mxu1  ;;  %1906 = vperm.xlu1 %3373, %v1859_v26   ;;  %v847_v51 = vrot.slane %v842_v17, %v846_v6 }
 0x310   :  { %v3079_v45 = vpop.f32.mrb[40].mxu1 }
 0x311   :  { %3096 = vmatmul.mubr.msk.bf16.gmra.mrb[40].mxu0 %vm1320_vm10, %v3535_v32  ;;  %v4184_v38 = vadd.f32 %v3079_v45, %v4155_v21  ;;  %v1258_v16 = vpop.f32.mrb[41].mxu1 }
 0x312   :  { %3099 = vmatprep.mubr.msk.bf16.mxu0 %vm1320_vm10, %v3536_v36  ;;  %v4187_v39 = vadd.f32 %v4155_v21, %v1258_v16  ;;  %v3080_v42 = vpop.f32.mrb[42].mxu1  ;;  %v4274_v36 = vld [vmem:[%s4768_s18] ss:$0 sm:$0xff] }
 0x313   :  { %v4190_v57 = vadd.f32 %v3080_v42, %v4155_v21  ;;  %v1261_v34 = vpop.f32.mrb[43].mxu1 }
 0x314   :  { %v4193_v59 = vadd.f32 %v4155_v21, %v1261_v34 }
 0x318   :  { %v3083_v37 = vpop.f32.mrb[44].mxu1 }
 0x319   :  { %3100 = vmatmul.mubr.msk.bf16.gmra.mrb[44].mxu0 %vm1320_vm10, %v3537_v44  ;;  %v4204_v41 = vadd.f32 %v3083_v37, %v4155_v21  ;;  %v1274_v48 = vpop.f32.mrb[45].mxu1 }
 0x31a   :  { %3103 = vmatprep.mubr.msk.bf16.mxu0 %vm1320_vm10, %v3538_v47  ;;  %v4207_v7 = vadd.f32 %v4155_v21, %v1274_v48  ;;  %v3084_v25 = vpop.f32.mrb[46].mxu1 }
 0x31b   :  { %v4210_v43 = vadd.f32 %v3084_v25, %v4155_v21  ;;  %v1277_v2 = vpop.f32.mrb[47].mxu1 }
 0x31c   :  { %v4213_v19 = vadd.f32 %v4155_v21, %v1277_v2 }
 0x320   :  { %v3087_v8 = vpop.f32.mrb[48].mxu1 }
 0x321   :  { %3104 = vmatmul.mubr.msk.bf16.gmra.mrb[48].mxu0 %vm1320_vm10, %v3539_v35  ;;  %v4220_v9 = vadd.f32 %v3087_v8, %v4155_v21  ;;  %v1290_v60 = vpop.f32.mrb[49].mxu1 }
 0x322   :  { %v4223_v52 = vadd.f32 %v4155_v21, %v1290_v60  ;;  %v3088_v54 = vpop.f32.mrb[50].mxu1 }
 0x323   :  { %v4226_v33 = vadd.f32 %v3088_v54, %v4155_v21  ;;  %v1293_v22 = vpop.f32.mrb[51].mxu1 }
 0x324   :  { %v4229_v55 = vadd.f32 %v4155_v21, %v1293_v22  ;;  %v4282_v22 = vadd.f32 %v4155_v21, %v4173_v29 }
 0x326   :  { %v4294_v29 = vpack.c.bf16 %v4282_v22, %v4286_v12 }
 0x3d4   :  { %v909_v18 = vpop.f32.mrb[32].mxu0 }
 0x3d5   :  { %v4268_v5 = vadd.f32 %v909_v18, %v847_v51  ;;  %v3034_v13 = vpop.f32.mrb[33].mxu0 }
 0x3d6   :  { %v912_v27 = vpop.f32.mrb[34].mxu0 }
 0x3d7   :  { %v915_v53 = vand.u32 2147483647, %v4268_v5  ;;  %v3035_v32 = vpop.f32.mrb[35].mxu0  ;;  %vm931_vm13 = vcmp.ge.f32.partialorder %v4268_v5, 0.0 }
 0x3d9   :  { %v916_v45 = vsub.f32 0.0, %v915_v53 }
 0x3db   :  { %v917_v16 = vmul.f32 1.442695, %v916_v45 }
 0x3dc   :  { %v3093_v42 = vpop.f32.mrb[36].mxu0 }
 0x3dd   :  { %3454 = vpow2.f32 %v917_v16  ;;  %v1380_v34 = vadd.f32 %v3093_v42, %v4274_v36  ;;  %v1371_v44 = vpop.f32.mrb[37].mxu0 }
 0x3de   :  { %v1372_v37 = vadd.f32 %v4274_v36, %v1371_v44  ;;  %v3094_v47 = vpop.f32.mrb[38].mxu0 }
 0x3df   :  { %v1383_v48 = vadd.f32 %v3094_v47, %v4274_v36  ;;  %v1374_v25 = vpop.f32.mrb[39].mxu0  ;;  %v1436_v35 = vmax.f32 %v1380_v34, 0.0 }
 0x3e0   :  { %v1375_v2 = vadd.f32 %v4274_v36, %v1374_v25  ;;  %v1434_v60 = vmax.f32 %v1372_v37, 0.0 }
 0x3e1   :  { %v1437_v8 = vmax.f32 %v1383_v48, 0.0 }
 0x3e2   :  { %v1435_v54 = vmax.f32 %v1375_v2, 0.0 }
 0x3e3   :  { %v1451_v46 = vpack.c.bf16 %v1437_v8, %v1436_v35 }
 0x3e4   :  { %v1450_v58 = vpack.c.bf16 %v1435_v54, %v1434_v60  ;;  %v3097_v1 = vpop.f32.mrb[40].mxu0 }
 0x3e5   :  { %v1396_v0 = vadd.f32 %v3097_v1, %v4274_v36  ;;  %v1387_v26 = vpop.f32.mrb[41].mxu0 }
 0x3e6   :  { %v1388_v17 = vadd.f32 %v4274_v36, %v1387_v26  ;;  %v3098_v51 = vpop.f32.mrb[42].mxu0  ;;  %3109 = vmatprep.mubr.msk.bf16.mxu1 %vm1320_vm10, %v1450_v58  ;;  %v935_v58 = vsub.f32 0.0, %v4268_v5 }
 0x3e7   :  { %v3455_v18 = vpop.eup %3454  ;;  %v1440_v13 = vmax.f32 %v1396_v0, 0.0  ;;  %v1399_v27 = vadd.f32 %v3098_v51, %v4274_v36  ;;  %v1390_v21 = vpop.f32.mrb[43].mxu0  ;;  %3110 = vmatmul.mubr.msk.bf16.vlgmr.msra.gmra.mrb[52].mxu1 %vm1320_vm10, %v1451_v46 }
 0x3e8   :  { %v919_v30 = vadd.f32 1.0, %v3455_v18  ;;  %v1438_v53 = vmax.f32 %v1388_v17, 0.0  ;;  %v1391_v56 = vadd.f32 %v4274_v36, %v1390_v21  ;;  %3144 = vmatpush3.bf16.msra.mxu1 %v1729_v50  ;;  %v922_v25 = vmul.f32 -0.5, %v3455_v18 }
 0x3e9   :  { %v1441_v32 = vmax.f32 %v1399_v27, 0.0  ;;  %3355 = vmatprep.subr.msk.bf16.mxu1 %vm687_vm5, %v4294_v29  ;;  %v925_v50 = vand.u32 2147483647, %v3455_v18 }
 0x3ea   :  { %3456 = vrcp.f32 %v919_v30  ;;  %v1439_v45 = vmax.f32 %v1391_v56, 0.0  ;;  %v923_v0 = vadd.f32 1.0, %v922_v25  ;;  %v113_v25 = vld [vmem:[%s4804_s2] sm:$0x1] }
 0x3eb   :  { %v1453_v16 = vpack.c.bf16 %v1441_v32, %v1440_v13  ;;  %3458 = vlog2.f32 %v919_v30  ;;  %v939_v30 = vmax.f32 %v4268_v5, 0.0  ;;  %v936_v32 = vmax.f32 %v935_v58, 0.0 }
 0x3ec   :  { %v1452_v42 = vpack.c.bf16 %v1439_v45, %v1438_v53  ;;  %v3101_v34 = vpop.f32.mrb[44].mxu0  ;;  %vm926_vm14 = vcmp.lt.f32.partialorder %v925_v50, 0.0004427343  ;;  %vm942_vm15 = vcmp.ge.f32.partialorder %v113_v25, 0.0 }
 0x3ed   :  { %v1412_v44 = vadd.f32 %v3101_v34, %v4274_v36  ;;  %v1403_v37 = vpop.f32.mrb[45].mxu0 }
 0x3ee   :  { %v1404_v47 = vadd.f32 %v4274_v36, %v1403_v37  ;;  %v3102_v48 = vpop.f32.mrb[46].mxu0  ;;  %3113 = vmatprep.mubr.msk.bf16.mxu1 %vm1320_vm10, %v1452_v42  ;;  %v114_v42 = vld [vmem:[%s4803_s15] sm:$0x1] }
 0x3ef   :  { %v1444_v2 = vmax.f32 %v1412_v44, 0.0  ;;  %v1415_v35 = vadd.f32 %v3102_v48, %v4274_v36  ;;  %v1406_v8 = vpop.f32.mrb[47].mxu0  ;;  %3114 = vmatmul.mubr.msk.bf16.gmra.mrb[56].mxu1 %vm1320_vm10, %v1453_v16  ;;  %v924_v44 = vmul.f32 %v3455_v18, %v923_v0 }
 0x3f0   :  { %v1442_v60 = vmax.f32 %v1404_v47, 0.0  ;;  %v1407_v54 = vadd.f32 %v4274_v36, %v1406_v8 }
 0x3f1   :  { %v1445_v46 = vmax.f32 %v1415_v35, 0.0 }
 0x3f2   :  { %v1443_v1 = vmax.f32 %v1407_v54, 0.0 }
 0x3f3   :  { %v1455_v26 = vpack.c.bf16 %v1445_v46, %v1444_v2  ;;  %v946_v46 = vsub.f32 1.0, %v114_v42 }
 0x3f4   :  { %v3457_v17 = vpop.eup %3456  ;;  %v1454_v51 = vpack.c.bf16 %v1443_v1, %v1442_v60  ;;  %v3105_v13 = vpop.f32.mrb[48].mxu0 }
 0x3f5   :  { %v3459_v27 = vpop.eup %3458  ;;  %v932_v21 = vmul.f32 %v3457_v17, %v3455_v18  ;;  %v1428_v53 = vadd.f32 %v3105_v13, %v4274_v36  ;;  %v1419_v56 = vpop.f32.mrb[49].mxu0  ;;  %v2672_v13 = vsel %vm942_vm15, 1.0, %v3555_v62 }
 0x3f6   :  { %v1420_v45 = vadd.f32 %v4274_v36, %v1419_v56  ;;  %v3106_v16 = vpop.f32.mrb[50].mxu0  ;;  %3117 = vmatprep.mubr.msk.bf16.mxu1 %vm1320_vm10, %v1454_v51  ;;  %v921_v34 = vmul.f32 0.6931472, %v3459_v27  ;;  %v4335_v56 = vpop.permute.xlu1 %1867 }
 0x3f7   :  { %v933_v37 = vsel %vm931_vm13, %v3457_v17, %v932_v21  ;;  %v1448_v47 = vmax.f32 %v1428_v53, 0.0  ;;  %v1431_v48 = vadd.f32 %v3106_v16, %v4274_v36  ;;  %v1422_v5 = vpop.f32.mrb[51].mxu0  ;;  %3118 = vmatmul.mubr.msk.bf16.gmra.mrb[60].mxu1 %vm1320_vm10, %v1455_v26  ;;  %vm1916_vm13 = vcmp.eq.s32.totalorder %v4255_v23, 1 }
 0x3f8   :  { %934 = vst [vmem:[%s4773_s23] sm:$0x1] %v933_v37  ;;  %v1446_v2 = vmax.f32 %v1420_v45, 0.0  ;;  %v1423_v35 = vadd.f32 %v4274_v36, %v1422_v5  ;;  %v927_v18 = vsel %vm926_vm14, %v924_v44, %v921_v34 }
 0x3f9   :  { %v1449_v8 = vmax.f32 %v1431_v48, 0.0  ;;  %v937_v60 = vadd.f32 %v936_v32, %v927_v18  ;;  %v940_v54 = vadd.f32 %v939_v30, %v927_v18  ;;  %v1602_v30 = vld [vmem:[%s4771_s21] sm:$0xf] }
 0x3fa   :  { %v1447_v58 = vmax.f32 %v1423_v35, 0.0  ;;  %3353 = vmatprep.subr.msk.bf16.mxu0 %vm712_vm2, %v1602_v30  ;;  %v1628_v53 = vsel %vm712_vm2, %v1602_v30, 0  ;;  %v4337_v32 = vpop.permute.xlu1 %1870  ;;  %v2130_v30 = vsel %vm687_vm5, %v4294_v29, 0  ;;  %v2099_v29 = vpack.c.bf16 %v4193_v59, %v4187_v39 }
 0x3fb   :  { %v1457_v1 = vpack.c.bf16 %v1449_v8, %v1448_v47  ;;  %v938_v0 = vmin.f32 %v937_v60, 100.0  ;;  %v941_v26 = vmin.f32 %v940_v54, 100.0  ;;  %3126 = vmatpush3.bf16.msra.mxu0 %v1628_v53  ;;  %v4354_v60 = vld [vmem:[%s4770_s20] ss:$0 sm:$0xff]  ;;  %vm1910_vm2 = vcmp.eq.s32.totalorder %v4335_v56, 1 }
 0x3fc   :  { %v1456_v50 = vpack.c.bf16 %v1447_v58, %v1446_v2  ;;  %3295 = vmatprep.subr.bf16.mxu0 %v3554_v61  ;;  %vm1911_vm7 = vcmp.eq.s32.totalorder %v4337_v32, 1 }
 0x3fd   :  { %v945_v17 = vmul.f32 %v938_v0, %v114_v42  ;;  %v947_v51 = vmul.f32 %v946_v46, %v941_v26 }
 0x3fe   :  { %3121 = vmatprep.mubr.msk.bf16.mxu1 %vm1320_vm10, %v1456_v50  ;;  %v4339_v45 = vpop.permute.xlu1 %1876 }
 0x3ff   :  { %3122 = vmatmul.mubr.msk.bf16.gmra.mrb[64].mxu1 %vm1320_vm10, %v1457_v1  ;;  %v948_v36 = vadd.f32 %v947_v51, %v945_v17  ;;  %vm1912_vm10 = vcmp.eq.s32.totalorder %v4251_v11, 1  ;;  %vm1913_vm11 = vcmp.eq.s32.totalorder %v4339_v45, 1 }
 0x401   :  { %v949_v27 = vmul.f32 %v2672_v13, %v948_v36  ;;  %v2098_v36 = vpack.c.bf16 %v4171_v31, %v4166_v40 }
 0x402   :  { %v4341_v16 = vpop.permute.xlu1 %1882 }
 0x403   :  { %v950_v21 = vsel %vm215_vm0, %v949_v27, 0.0  ;;  %vm1915_vm3 = vcmp.eq.s32.totalorder %v4341_v16, 1 }
 0x404   :  { %951 = vadd.xlane.f32.xlu1 %v950_v21 }
 0x406   :  { %v4343_v42 = vpop.permute.xlu1 %1888 }
 0x407   :  { %vm1917_vm15 = vcmp.eq.s32.totalorder %v4343_v42, 1 }
 0x40a   :  { %v4345_v34 = vpop.permute.xlu1 %1894 }
 0x40b   :  { %vm1919_vm14 = vcmp.eq.s32.totalorder %v4345_v34, 1 }
 0x40e   :  { %v4347_v44 = vpop.permute.xlu1 %1900 }
 0x412   :  { %v4349_v37 = vpop.permute.xlu1 %1906 }
 0x491   :  { %v952_v47 = vpop.xlane.xlu1 %951 }
 0x492   :  { %v953_v48 = vrot.slane %v952_v47, 4 }
 0x494   :  { %v954_v5 = vadd.f32 %v953_v48, %v952_v47 }
 0x496   :  { %v955_v25 = vrot.slane %v954_v5, 2 }
 0x498   :  { %v956_v2 = vadd.f32 %v955_v25, %v954_v5 }
 0x49a   :  { %v957_v35 = vrot.slane %v956_v2, 1 }
 0x49c   :  { %v958_v18 = vadd.f32 %v957_v35, %v956_v2 }
 0x49e   :  { %3363 = vpush %v958_v18 }
 0x4ba   :  { %v3111_v8 = vpop.f32.mrb[52].mxu1 }
 0x4bb   :  { %v1531_v54 = vpop.f32.mrb[53].mxu1  ;;  %v1540_v58 = vadd.f32 %v3111_v8, %v4354_v60 }
 0x4bc   :  { %v3112_v46 = vpop.f32.mrb[54].mxu1  ;;  %v1532_v26 = vadd.f32 %v4354_v60, %v1531_v54 }
 0x4bd   :  { %v1543_v1 = vadd.f32 %v3112_v46, %v4354_v60  ;;  %v1534_v0 = vpop.f32.mrb[55].mxu1  ;;  %v2133_v46 = vsel %vm687_vm5, %v2098_v36, 0 }
 0x4be   :  { %v1535_v50 = vadd.f32 %v4354_v60, %v1534_v0 }
 0x4bf   :  { %v1595_v17 = vpack.c.bf16 %v1543_v1, %v1540_v58 }
 0x4c0   :  { %v1594_v51 = vpack.c.bf16 %v1535_v50, %v1532_v26 }
 0x4c2   :  { %v3115_v13 = vpop.f32.mrb[56].mxu1  ;;  %3127 = vmatprep.mubr.msk.bf16.mxu0 %vm687_vm5, %v1594_v51  ;;  %3145 = vmatprep.mubr.msk.bf16.mxu1 %vm687_vm5, %v1594_v51 }
 0x4c3   :  { %v1556_v27 = vadd.f32 %v3115_v13, %v4354_v60  ;;  %v1547_v21 = vpop.f32.mrb[57].mxu1  ;;  %3128 = vmatmul.mubr.msk.bf16.vlgmr.msra.gmra.mrb[52].mxu0 %vm687_vm5, %v1595_v17  ;;  %3146 = vmatmul.mubr.msk.bf16.vlgmr.msra.gmra.mrb[68].mxu1 %vm687_vm5, %v1595_v17 }
 0x4c4   :  { %v1548_v53 = vadd.f32 %v4354_v60, %v1547_v21  ;;  %3197 = vmatpush3.bf16.xpose.msra.mxu1 %v2130_v30  ;;  %v3116_v47 = vpop.f32.mrb[58].mxu1  ;;  %v2136_v30 = vsel %vm687_vm5, %v2099_v29, 0 }
 0x4c5   :  { %v1559_v48 = vadd.f32 %v3116_v47, %v4354_v60  ;;  %3356 = vmatprep.subr.msk.bf16.mxu1 %vm687_vm5, %v2098_v36  ;;  %v1550_v5 = vpop.f32.mrb[59].mxu1  ;;  %v2100_v36 = vpack.c.bf16 %v4190_v57, %v4184_v38 }
 0x4c6   :  { %v1551_v25 = vadd.f32 %v4354_v60, %v1550_v5 }
 0x4c7   :  { %v1597_v2 = vpack.c.bf16 %v1559_v48, %v1556_v27 }
 0x4c8   :  { %v1596_v35 = vpack.c.bf16 %v1551_v25, %v1548_v53 }
 0x4ca   :  { %v3119_v18 = vpop.f32.mrb[60].mxu1  ;;  %3131 = vmatprep.mubr.msk.bf16.mxu0 %vm687_vm5, %v1596_v35  ;;  %3149 = vmatprep.mubr.msk.bf16.mxu1 %vm687_vm5, %v1596_v35 }
 0x4cb   :  { %v1572_v8 = vadd.f32 %v3119_v18, %v4354_v60  ;;  %v1563_v54 = vpop.f32.mrb[61].mxu1  ;;  %3132 = vmatmul.mubr.msk.bf16.gmra.mrb[56].mxu0 %vm687_vm5, %v1597_v2  ;;  %3150 = vmatmul.mubr.msk.bf16.gmra.mrb[72].mxu1 %vm687_vm5, %v1597_v2  ;;  %v2101_v18 = vpack.c.bf16 %v4213_v19, %v4207_v7 }
 0x4cc   :  { %v1564_v58 = vadd.f32 %v4354_v60, %v1563_v54  ;;  %3199 = vmatpush3.bf16.xpose.msra.mxu1 %v2133_v46  ;;  %v3120_v1 = vpop.f32.mrb[62].mxu1  ;;  %v2103_v54 = vpack.c.bf16 %v4229_v55, %v4223_v52 }
 0x4cd   :  { %v1575_v0 = vadd.f32 %v3120_v1, %v4354_v60  ;;  %3357 = vmatprep.subr.msk.bf16.mxu1 %vm687_vm5, %v2099_v29  ;;  %v1566_v26 = vpop.f32.mrb[63].mxu1  ;;  %v2139_v29 = vsel %vm687_vm5, %v2100_v36, 0 }
 0x4ce   :  { %v1567_v50 = vadd.f32 %v4354_v60, %v1566_v26  ;;  %v2148_v1 = vsel %vm687_vm5, %v2103_v54, 0 }
 0x4cf   :  { %v1599_v17 = vpack.c.bf16 %v1575_v0, %v1572_v8  ;;  %s3364_s20 = spop %3363  ;;  %v2142_v8 = vsel %vm687_vm5, %v2101_v18, 0 }
 0x4d0   :  { %v1598_v51 = vpack.c.bf16 %v1567_v50, %v1564_v58  ;;  %s960_s19 = smul.f32 0.125, %s3364_s20  ;;  %v2104_v58 = vpack.c.bf16 %v4226_v33, %v4220_v9 }
 0x4d2   :  { %962 = sst [smem:[#allocation3]] %s960_s19  ;;  %v3123_v13 = vpop.f32.mrb[64].mxu1  ;;  %3135 = vmatprep.mubr.msk.bf16.mxu0 %vm687_vm5, %v1598_v51  ;;  %3153 = vmatprep.mubr.msk.bf16.mxu1 %vm687_vm5, %v1598_v51  ;;  %v2151_v0 = vsel %vm687_vm5, %v2104_v58, 0 }
 0x4d3   :  { %v1588_v27 = vadd.f32 %v3123_v13, %v4354_v60  ;;  %v1579_v21 = vpop.f32.mrb[65].mxu1  ;;  %3136 = vmatmul.mubr.msk.bf16.gmra.mrb[60].mxu0 %vm687_vm5, %v1599_v17  ;;  %3154 = vmatmul.mubr.msk.bf16.gmra.mrb[76].mxu1 %vm687_vm5, %v1599_v17 }
 0x4d4   :  { %v1580_v53 = vadd.f32 %v4354_v60, %v1579_v21  ;;  %3201 = vmatpush3.bf16.xpose.msra.mxu1 %v2136_v30  ;;  %v3124_v47 = vpop.f32.mrb[66].mxu1 }
 0x4d5   :  { %v1591_v48 = vadd.f32 %v3124_v47, %v4354_v60  ;;  %3358 = vmatprep.subr.msk.bf16.mxu1 %vm687_vm5, %v2100_v36  ;;  %v1582_v5 = vpop.f32.mrb[67].mxu1 }
 0x4d6   :  { %v1583_v25 = vadd.f32 %v4354_v60, %v1582_v5  ;;  %v2102_v60 = vpack.c.bf16 %v4210_v43, %v4204_v41 }
 0x4d7   :  { %v1601_v2 = vpack.c.bf16 %v1591_v48, %v1588_v27 }
 0x4d8   :  { %v1600_v35 = vpack.c.bf16 %v1583_v25, %v1580_v53  ;;  %v2145_v46 = vsel %vm687_vm5, %v2102_v60, 0 }
 0x4da   :  { %3139 = vmatprep.mubr.msk.bf16.mxu0 %vm687_vm5, %v1600_v35  ;;  %3157 = vmatprep.mubr.msk.bf16.mxu1 %vm687_vm5, %v1600_v35 }
 0x4db   :  { %3140 = vmatmul.mubr.msk.bf16.gmra.mrb[64].mxu0 %vm687_vm5, %v1601_v2  ;;  %3158 = vmatmul.mubr.msk.bf16.gmra.mrb[80].mxu1 %vm687_vm5, %v1601_v2 }
 0x4dc   :  { %3203 = vmatpush3.bf16.xpose.msra.mxu1 %v2139_v29  ;;  %3193 = vmatprep.mubr.msk.f32.mxu0 %vm3556_vm4, %v3555_v62 }
 0x4dd   :  { %3359 = vmatprep.subr.msk.bf16.mxu1 %vm687_vm5, %v2101_v18 }
 0x4e4   :  { %3205 = vmatpush3.bf16.xpose.msra.mxu1 %v2142_v8 }
 0x4e5   :  { %3360 = vmatprep.subr.msk.bf16.mxu1 %vm687_vm5, %v2102_v60 }
 0x4ec   :  { %3207 = vmatpush3.bf16.xpose.msra.mxu1 %v2145_v46 }
 0x4ed   :  { %3361 = vmatprep.subr.msk.bf16.mxu1 %vm687_vm5, %v2103_v54 }
 0x4f4   :  { %3209 = vmatpush3.bf16.xpose.msra.mxu1 %v2148_v1 }
 0x4f5   :  { %3362 = vmatprep.subr.msk.bf16.mxu1 %vm687_vm5, %v2104_v58 }
 0x4fc   :  { %3211 = vmatpush3.bf16.xpose.msra.mxu1 %v2151_v0 }
 0x596   :  { %v3129_v26 = vpop.f32.mrb[52].mxu0  ;;  %v3147_v50 = vpop.f32.mrb[68].mxu1 }
 0x597   :  { %v1926_v17 = vsel %vm1910_vm2, %v3129_v26, %v3147_v50  ;;  %v1664_v51 = vpop.f32.mrb[53].mxu0  ;;  %v1765_v13 = vpop.f32.mrb[69].mxu1  ;;  %vm1922_vm2 = vcmp.eq.s32.totalorder %v4261_v15, 1 }
 0x598   :  { %v1924_v36 = vsel %vm1908_vm1, %v1664_v51, %v1765_v13  ;;  %v3130_v27 = vpop.f32.mrb[54].mxu0  ;;  %v3148_v21 = vpop.f32.mrb[70].mxu1  ;;  %v1942_v48 = vmul.f32 %v1926_v17, %v4166_v40  ;;  %vm1920_vm1 = vcmp.eq.s32.totalorder %v4259_v3, 1 }
 0x599   :  { %v1927_v30 = vsel %vm1911_vm7, %v3130_v27, %v3148_v21  ;;  %v1667_v53 = vpop.f32.mrb[55].mxu0  ;;  %v1768_v47 = vpop.f32.mrb[71].mxu1  ;;  %v1940_v63 = vmul.f32 %v1924_v36, %v4286_v12  ;;  %vm1923_vm7 = vcmp.eq.s32.totalorder %v4349_v37, 1 }
 0x59a   :  { %v1943_v56 = vmul.f32 %v1927_v30, %v4171_v31  ;;  %v2090_v5 = vpack.c.bf16 %v1927_v30, %v1926_v17  ;;  %v1925_v25 = vsel %vm1909_vm8, %v1667_v53, %v1768_v47  ;;  %vm1921_vm8 = vcmp.eq.s32.totalorder %v4347_v44, 1 }
 0x59b   :  { %v1941_v2 = vmul.f32 %v1925_v25, %v4282_v22  ;;  %v2089_v35 = vpack.c.bf16 %v1925_v25, %v1924_v36 }
 0x59c   :  { %v3300_v32 = vpack.c.bf16 %v1943_v56, %v1942_v48 }
 0x59d   :  { %v3296_v18 = vpack.c.bf16 %v1941_v2, %v1940_v63  ;;  %3212 = vmatprep.mubr.msk.bf16.mxu1 %vm687_vm5, %v2089_v35 }
 0x59e   :  { %v3133_v4 = vpop.f32.mrb[56].mxu0  ;;  %v3151_v29 = vpop.f32.mrb[72].mxu1  ;;  %3213 = vmatmul.mubr.msk.bf16.vlgmr.msra.gmra.mrb[84].mxu1 %vm687_vm5, %v2090_v5 }
 0x59f   :  { %v1930_v40 = vsel %vm1914_vm9, %v3133_v4, %v3151_v29  ;;  %v1680_v31 = vpop.f32.mrb[57].mxu0  ;;  %v1781_v60 = vpop.f32.mrb[73].mxu1  ;;  %3298 = vmatpush3.bf16.xpose.msk.msra.mxu0 %vm3916_vm6, %v3296_v18 }
 0x5a0   :  { %v1928_v22 = vsel %vm1912_vm10, %v1680_v31, %v1781_v60  ;;  %v3134_v12 = vpop.f32.mrb[58].mxu0  ;;  %v3152_v8 = vpop.f32.mrb[74].mxu1  ;;  %3299 = vmatprep.subr.bf16.mxu0 %v3554_v61  ;;  %v4438_v11 = vmul.f32 %v1930_v40, %v4184_v38 }
 0x5a1   :  { %v1931_v10 = vsel %vm1915_vm3, %v3134_v12, %v3152_v8  ;;  %v1683_v54 = vpop.f32.mrb[59].mxu0  ;;  %v1784_v46 = vpop.f32.mrb[75].mxu1  ;;  %v1944_v16 = vmul.f32 %v1928_v22, %v4187_v39 }
 0x5a2   :  { %v4441_v58 = vmul.f32 %v1931_v10, %v4190_v57  ;;  %v2092_v1 = vpack.c.bf16 %v1931_v10, %v1930_v40  ;;  %v1929_v0 = vsel %vm1913_vm11, %v1683_v54, %v1784_v46 }
 0x5a3   :  { %v1945_v26 = vmul.f32 %v1929_v0, %v4193_v59  ;;  %v2091_v50 = vpack.c.bf16 %v1929_v0, %v1928_v22 }
 0x5a4   :  { %v3308_v17 = vpack.c.bf16 %v4441_v58, %v4438_v11 }
 0x5a5   :  { %v3304_v45 = vpack.c.bf16 %v1945_v26, %v1944_v16  ;;  %3216 = vmatprep.mubr.msk.bf16.mxu1 %vm687_vm5, %v2091_v50 }
 0x5a6   :  { %v3137_v38 = vpop.f32.mrb[60].mxu0  ;;  %v3155_v51 = vpop.f32.mrb[76].mxu1  ;;  %3217 = vmatmul.mubr.msk.bf16.gmra.mrb[88].mxu1 %vm687_vm5, %v2092_v1 }
 0x5a7   :  { %v1934_v57 = vsel %vm1918_vm12, %v3137_v38, %v3155_v51  ;;  %v1696_v13 = vpop.f32.mrb[61].mxu0  ;;  %v1797_v39 = vpop.f32.mrb[77].mxu1  ;;  %3302 = vmatpush3.bf16.xpose.msk.msra.mxu0 %vm3916_vm6, %v3300_v32 }
 0x5a8   :  { %v1932_v59 = vsel %vm1916_vm13, %v1696_v13, %v1797_v39  ;;  %v3138_v36 = vpop.f32.mrb[62].mxu0  ;;  %v3156_v27 = vpop.f32.mrb[78].mxu1  ;;  %3303 = vmatprep.subr.bf16.mxu0 %v3554_v61  ;;  %v1950_v23 = vmul.f32 %v1934_v57, %v4204_v41 }
 0x5a9   :  { %v1935_v14 = vsel %vm1919_vm14, %v3138_v36, %v3156_v27  ;;  %v1699_v21 = vpop.f32.mrb[63].mxu0  ;;  %v1800_v30 = vpop.f32.mrb[79].mxu1  ;;  %v1948_v56 = vmul.f32 %v1932_v59, %v4207_v7 }
 0x5aa   :  { %v1951_v53 = vmul.f32 %v1935_v14, %v4210_v43  ;;  %v2094_v47 = vpack.c.bf16 %v1935_v14, %v1934_v57  ;;  %v1933_v48 = vsel %vm1917_vm15, %v1699_v21, %v1800_v30 }
 0x5ab   :  { %v1949_v34 = vmul.f32 %v1933_v48, %v4213_v19  ;;  %v2093_v5 = vpack.c.bf16 %v1933_v48, %v1932_v59 }
 0x5ac   :  { %v3316_v25 = vpack.c.bf16 %v1951_v53, %v1950_v23 }
 0x5ad   :  { %v3312_v63 = vpack.c.bf16 %v1949_v34, %v1948_v56  ;;  %3220 = vmatprep.mubr.msk.bf16.mxu1 %vm687_vm5, %v2093_v5 }
 0x5ae   :  { %v3141_v42 = vpop.f32.mrb[64].mxu0  ;;  %v3159_v2 = vpop.f32.mrb[80].mxu1  ;;  %3221 = vmatmul.mubr.msk.bf16.gmra.mrb[92].mxu1 %vm687_vm5, %v2094_v47 }
 0x5af   :  { %v1938_v41 = vsel %vm1922_vm2, %v3141_v42, %v3159_v2  ;;  %v1712_v43 = vpop.f32.mrb[65].mxu0  ;;  %v1813_v35 = vpop.f32.mrb[81].mxu1  ;;  %3306 = vmatpush3.bf16.xpose.msk.msra.mxu0 %vm3916_vm6, %v3304_v45 }
 0x5b0   :  { %v1936_v7 = vsel %vm1920_vm1, %v1712_v43, %v1813_v35  ;;  %v3142_v19 = vpop.f32.mrb[66].mxu0  ;;  %v3160_v32 = vpop.f32.mrb[82].mxu1  ;;  %3307 = vmatprep.subr.bf16.mxu0 %v3554_v61  ;;  %v1954_v3 = vmul.f32 %v1938_v41, %v4220_v9 }
 0x5b1   :  { %v1939_v15 = vsel %vm1923_vm7, %v3142_v19, %v3160_v32  ;;  %v1715_v18 = vpop.f32.mrb[67].mxu0  ;;  %v1816_v4 = vpop.f32.mrb[83].mxu1  ;;  %v1952_v60 = vmul.f32 %v1936_v7, %v4223_v52 }
 0x5b2   :  { %v1955_v29 = vmul.f32 %v1939_v15, %v4226_v33  ;;  %v2096_v40 = vpack.c.bf16 %v1939_v15, %v1938_v41  ;;  %v1937_v31 = vsel %vm1921_vm8, %v1715_v18, %v1816_v4 }
 0x5b3   :  { %v1953_v37 = vmul.f32 %v1937_v31, %v4229_v55  ;;  %v2095_v22 = vpack.c.bf16 %v1937_v31, %v1936_v7 }
 0x5b4   :  { %v3324_v12 = vpack.c.bf16 %v1955_v29, %v1954_v3 }
 0x5b5   :  { %v3320_v8 = vpack.c.bf16 %v1953_v37, %v1952_v60  ;;  %3224 = vmatprep.mubr.msk.bf16.mxu1 %vm687_vm5, %v2095_v22 }
 0x5b6   :  { %3225 = vmatmul.mubr.msk.bf16.gmra.mrb[96].mxu1 %vm687_vm5, %v2096_v40 }
 0x5b7   :  { %3310 = vmatpush3.bf16.xpose.msk.msra.mxu0 %vm3916_vm6, %v3308_v17 }
 0x5b8   :  { %3311 = vmatprep.subr.bf16.mxu0 %v3554_v61 }
 0x5bf   :  { %3314 = vmatpush3.bf16.xpose.msk.msra.mxu0 %vm3916_vm6, %v3312_v63 }
 0x5c0   :  { %3315 = vmatprep.subr.bf16.mxu0 %v3554_v61 }
 0x5c7   :  { %3318 = vmatpush3.bf16.xpose.msk.msra.mxu0 %vm3916_vm6, %v3316_v25 }
 0x5c8   :  { %3319 = vmatprep.subr.bf16.mxu0 %v3554_v61 }
 0x5cf   :  { %3322 = vmatpush3.bf16.xpose.msk.msra.mxu0 %vm3916_vm6, %v3320_v8 }
 0x5d0   :  { %3323 = vmatprep.subr.bf16.mxu0 %v3554_v61 }
 0x5d7   :  { %3326 = vmatpush3.bf16.xpose.msk.msra.mxu0 %vm3916_vm6, %v3324_v12 }
 0x5d8   :  { %3327 = vmatprep.subr.bf16.mxu0 %v3554_v61 }
 0x5de   :  { %3194 = vmatmul.mubr.msk.f32.vlgmr.msra.gmra.mrb[68].mxu0 %vm687_vm5, %v3557_v28 }
 0x5df   :  { %3260 = vmatprep.mubr.msk.f32.mxu0 %vm3556_vm4, %v3555_v62 }
 0x671   :  { %v4494_v9 = vpop.f32.mrb[84].mxu1 }
 0x672   :  { %v2268_v52 = vand.u32 2147483647, %v4494_v9  ;;  %v4497_v33 = vpop.f32.mrb[85].mxu1  ;;  %v2252_v15 = vmax.f32 %v4494_v9, 0.0 }
 0x673   :  { %v2266_v55 = vand.u32 2147483647, %v4497_v33  ;;  %v4500_v44 = vpop.f32.mrb[86].mxu1  ;;  %v2250_v4 = vmax.f32 %v4497_v33, 0.0 }
 0x674   :  { %v2284_v24 = vsub.f32 0.0, %v2268_v52  ;;  %v2269_v10 = vand.u32 2147483647, %v4500_v44  ;;  %v4503_v54 = vpop.f32.mrb[87].mxu1  ;;  %v2253_v31 = vmax.f32 %v4500_v44, 0.0 }
 0x675   :  { %v2282_v46 = vsub.f32 0.0, %v2266_v55  ;;  %v2267_v28 = vand.u32 2147483647, %v4503_v54  ;;  %v2251_v37 = vmax.f32 %v4503_v54, 0.0 }
 0x676   :  { %v2302_v11 = vmul.f32 1.442695, %v2284_v24  ;;  %v2285_v58 = vsub.f32 0.0, %v2269_v10 }
 0x677   :  { %v2298_v1 = vmul.f32 1.442695, %v2282_v46  ;;  %v2283_v0 = vsub.f32 0.0, %v2267_v28 }
 0x678   :  { %3460 = vpow2.f32 %v2302_v11  ;;  %v2304_v16 = vmul.f32 1.442695, %v2285_v58 }
 0x679   :  { %3462 = vpow2.f32 %v2298_v1  ;;  %v2300_v26 = vmul.f32 1.442695, %v2283_v0  ;;  %v4506_v50 = vpop.f32.mrb[88].mxu1 }
 0x67a   :  { %3464 = vpow2.f32 %v2304_v16  ;;  %v2272_v17 = vand.u32 2147483647, %v4506_v50  ;;  %v4509_v45 = vpop.f32.mrb[89].mxu1  ;;  %v2256_v22 = vmax.f32 %v4506_v50, 0.0 }
 0x67b   :  { %3466 = vpow2.f32 %v2300_v26  ;;  %v2270_v38 = vand.u32 2147483647, %v4509_v45  ;;  %v4512_v51 = vpop.f32.mrb[90].mxu1  ;;  %v2254_v46 = vmax.f32 %v4509_v45, 0.0 }
 0x67c   :  { %v2288_v57 = vsub.f32 0.0, %v2272_v17  ;;  %v2273_v13 = vand.u32 2147483647, %v4512_v51  ;;  %v4515_v39 = vpop.f32.mrb[91].mxu1  ;;  %v2257_v28 = vmax.f32 %v4512_v51, 0.0 }
 0x67d   :  { %v2286_v59 = vsub.f32 0.0, %v2270_v38  ;;  %v2271_v36 = vand.u32 2147483647, %v4515_v39  ;;  %v2255_v11 = vmax.f32 %v4515_v39, 0.0 }
 0x67e   :  { %v2310_v27 = vmul.f32 1.442695, %v2288_v57  ;;  %v2289_v14 = vsub.f32 0.0, %v2273_v13 }
 0x67f   :  { %v2306_v21 = vmul.f32 1.442695, %v2286_v59  ;;  %v2287_v30 = vsub.f32 0.0, %v2271_v36 }
 0x680   :  { %3468 = vpow2.f32 %v2310_v27  ;;  %v2312_v23 = vmul.f32 1.442695, %v2289_v14 }
 0x681   :  { %3470 = vpow2.f32 %v2306_v21  ;;  %v2308_v53 = vmul.f32 1.442695, %v2287_v30  ;;  %v4518_v47 = vpop.f32.mrb[92].mxu1 }
 0x682   :  { %v3461_v48 = vpop.eup %3460  ;;  %3472 = vpow2.f32 %v2312_v23  ;;  %v2276_v56 = vand.u32 2147483647, %v4518_v47  ;;  %v4521_v34 = vpop.f32.mrb[93].mxu1 }
 0x683   :  { %v3463_v5 = vpop.eup %3462  ;;  %v2348_v25 = vadd.f32 1.0, %v3461_v48  ;;  %v2351_v63 = vmul.f32 -0.5, %v3461_v48  ;;  %3474 = vpow2.f32 %v2308_v53  ;;  %v4523_v42 = vpop.f32.mrb[94].mxu1  ;;  %v2354_v18 = vand.u32 2147483647, %v3461_v48 }
 0x684   :  { %v3465_v2 = vpop.eup %3464  ;;  %v2330_v41 = vadd.f32 1.0, %v3463_v5  ;;  %v4525_v43 = vpop.f32.mrb[95].mxu1  ;;  %v2333_v7 = vmul.f32 -0.5, %v3463_v5  ;;  %v2292_v32 = vsub.f32 0.0, %v2276_v56  ;;  %v2336_v29 = vand.u32 2147483647, %v3463_v5 }
 0x685   :  { %v3467_v35 = vpop.eup %3466  ;;  %3476 = vlog2.f32 %v2348_v25  ;;  %v2357_v19 = vadd.f32 1.0, %v3465_v2  ;;  %v2352_v3 = vadd.f32 1.0, %v2351_v63  ;;  %v2360_v60 = vmul.f32 -0.5, %v3465_v2 }
 0x686   :  { %3478 = vlog2.f32 %v2330_v41  ;;  %v2339_v40 = vadd.f32 1.0, %v3467_v35  ;;  %v2334_v12 = vadd.f32 1.0, %v2333_v7  ;;  %v2342_v8 = vmul.f32 -0.5, %v3467_v35 }
 0x687   :  { %3480 = vlog2.f32 %v2357_v19  ;;  %v2318_v52 = vmul.f32 1.442695, %v2292_v32  ;;  %v2363_v10 = vand.u32 2147483647, %v3465_v2  ;;  %v2353_v0 = vmul.f32 %v3461_v48, %v2352_v3 }
 0x688   :  { %3482 = vlog2.f32 %v2339_v40  ;;  %vm4543_vm4 = vcmp.lt.f32.partialorder %v2354_v18, 0.0004427343  ;;  %vm4547_vm5 = vcmp.lt.f32.partialorder %v2336_v29, 0.0004427343  ;;  %v2361_v13 = vadd.f32 1.0, %v2360_v60 }
 0x689   :  { %v4532_v55 = vpop.f32.mrb[96].mxu1  ;;  %v2345_v59 = vand.u32 2147483647, %v3467_v35  ;;  %3484 = vpow2.f32 %v2318_v52  ;;  %v2335_v21 = vmul.f32 %v3463_v5, %v2334_v12  ;;  %v2343_v30 = vadd.f32 1.0, %v2342_v8 }
 0x68a   :  { %v4534_v24 = vpop.eup %3468  ;;  %v4539_v58 = vpop.f32.mrb[97].mxu1  ;;  %vm4562_vm6 = vcmp.lt.f32.partialorder %v2363_v10, 0.0004427343  ;;  %v2274_v56 = vand.u32 2147483647, %v4521_v34  ;;  %v2362_v32 = vmul.f32 %v3465_v2, %v2361_v13 }
 0x68b   :  { %v4541_v1 = vpop.eup %3470  ;;  %v2384_v17 = vadd.f32 1.0, %v4534_v24  ;;  %v4552_v38 = vpop.f32.mrb[98].mxu1  ;;  %v2387_v48 = vmul.f32 -0.5, %v4534_v24  ;;  %v2390_v63 = vand.u32 2147483647, %v4534_v24  ;;  %v2344_v60 = vmul.f32 %v3467_v35, %v2343_v30 }
 0x68c   :  { %v4554_v57 = vpop.eup %3472  ;;  %v2366_v36 = vadd.f32 1.0, %v4541_v1  ;;  %v4557_v27 = vpop.f32.mrb[99].mxu1  ;;  %v2369_v41 = vmul.f32 -0.5, %v4541_v1  ;;  %vm4571_vm9 = vcmp.lt.f32.partialorder %v2345_v59, 0.0004427343  ;;  %v2290_v35 = vsub.f32 0.0, %v2274_v56 }
 0x68d   :  { %v4559_v14 = vpop.eup %3474  ;;  %3486 = vlog2.f32 %v2384_v17  ;;  %v2393_v23 = vadd.f32 1.0, %v4554_v57  ;;  %v2396_v3 = vmul.f32 -0.5, %v4554_v57  ;;  %v2372_v12 = vand.u32 2147483647, %v4541_v1 }
 0x68e   :  { %3488 = vlog2.f32 %v2366_v36  ;;  %v2375_v5 = vadd.f32 1.0, %v4559_v14  ;;  %v2388_v10 = vadd.f32 1.0, %v2387_v48  ;;  %v2378_v17 = vmul.f32 -0.5, %v4559_v14 }
 0x68f   :  { %v3477_v25 = vpop.eup %3476  ;;  %3490 = vlog2.f32 %v2393_v23  ;;  %vm4582_vm10 = vcmp.lt.f32.partialorder %v2390_v63, 0.0004427343  ;;  %v2370_v36 = vadd.f32 1.0, %v2369_v41  ;;  %v2397_v16 = vadd.f32 1.0, %v2396_v3 }
 0x690   :  { %v3479_v7 = vpop.eup %3478  ;;  %v2350_v19 = vmul.f32 0.6931472, %v3477_v25  ;;  %3492 = vlog2.f32 %v2375_v5  ;;  %v2277_v25 = vand.u32 2147483647, %v4523_v42  ;;  %v2379_v41 = vadd.f32 1.0, %v2378_v17 }
 0x691   :  { %v3481_v29 = vpop.eup %3480  ;;  %v2332_v40 = vmul.f32 0.6931472, %v3479_v7  ;;  %v2381_v5 = vand.u32 2147483647, %v4559_v14  ;;  %v2371_v33 = vmul.f32 %v4541_v1, %v2370_v36  ;;  %vm4608_vm3 = vcmp.lt.f32.partialorder %v2372_v12, 0.0004427343 }
 0x692   :  { %v2356_v8 = vsel %vm4543_vm4, %v2353_v0, %v2350_v19  ;;  %v2359_v52 = vmul.f32 0.6931472, %v3481_v29  ;;  %v3483_v2 = vpop.eup %3482  ;;  %v2399_v0 = vand.u32 2147483647, %v4554_v57  ;;  %v2275_v1 = vand.u32 2147483647, %v4525_v43 }
 0x693   :  { %v2338_v13 = vsel %vm4547_vm5, %v2335_v21, %v2332_v40  ;;  %v2341_v23 = vmul.f32 0.6931472, %v3483_v2  ;;  %v4591_v48 = vadd.f32 %v2356_v8, %v2252_v15  ;;  %v2314_v21 = vmul.f32 1.442695, %v2290_v35  ;;  %v4596_v63 = vpop.eup %3484 }
 0x694   :  { %v2365_v30 = vsel %vm4562_vm6, %v2362_v32, %v2359_v52  ;;  %v2474_v53 = vadd.f32 %v2338_v13, %v2250_v4  ;;  %v2389_v32 = vmul.f32 %v4534_v24, %v2388_v10  ;;  %vm4612_vm11 = vcmp.lt.f32.partialorder %v2399_v0, 0.0004427343 }
 0x695   :  { %v2477_v26 = vadd.f32 %v2365_v30, %v2253_v31  ;;  %v2347_v56 = vsel %vm4571_vm9, %v2344_v60, %v2341_v23  ;;  %3494 = vpow2.f32 %v2314_v21  ;;  %v2293_v31 = vsub.f32 0.0, %v2277_v25 }
 0x696   :  { %v2475_v44 = vadd.f32 %v2347_v56, %v2251_v37  ;;  %v2398_v24 = vmul.f32 %v4554_v57, %v2397_v16  ;;  %v2380_v52 = vmul.f32 %v4559_v14, %v2379_v41  ;;  %vm4623_vm12 = vcmp.lt.f32.partialorder %v2381_v5, 0.0004427343 }
 0x697   :  { %v3487_v9 = vpop.eup %3486  ;;  %v3331_v15 = vpack.c.bf16 %v2477_v26, %v4591_v48  ;;  %v2320_v54 = vmul.f32 1.442695, %v2293_v31  ;;  %v2420_v57 = vadd.f32 1.0, %v4596_v63  ;;  %v2291_v13 = vsub.f32 0.0, %v2275_v1 }
 0x698   :  { %v3489_v7 = vpop.eup %3488  ;;  %v2386_v19 = vmul.f32 0.6931472, %v3487_v9  ;;  %v3328_v3 = vpack.c.bf16 %v2475_v44, %v2474_v53  ;;  %v2280_v36 = vand.u32 2147483647, %v4532_v55  ;;  %v2278_v35 = vand.u32 2147483647, %v4539_v58 }
 0x699   :  { %v3491_v18 = vpop.eup %3490  ;;  %v2368_v29 = vmul.f32 0.6931472, %v3489_v7  ;;  %3496 = vpow2.f32 %v2320_v54  ;;  %v2316_v16 = vmul.f32 1.442695, %v2291_v13  ;;  %v2281_v0 = vand.u32 2147483647, %v4552_v38 }
 0x69a   :  { %v2392_v37 = vsel %vm4582_vm10, %v2389_v32, %v2386_v19  ;;  %v2395_v60 = vmul.f32 0.6931472, %v3491_v18  ;;  %v3493_v12 = vpop.eup %3492  ;;  %3329 = vmatpush3.bf16.xpose.msra.mxu0 %v3328_v3  ;;  %v2279_v26 = vand.u32 2147483647, %v4557_v27  ;;  %v2423_v9 = vmul.f32 -0.5, %v4596_v63 }
 0x69b   :  { %v2374_v8 = vsel %vm4608_vm3, %v2371_v33, %v2368_v29  ;;  %v2377_v2 = vmul.f32 0.6931472, %v3493_v12  ;;  %3330 = vmatprep.subr.bf16.mxu0 %v3554_v61  ;;  %v4633_v59 = vadd.f32 %v2392_v37, %v2256_v22  ;;  %v2296_v22 = vsub.f32 0.0, %v2280_v36 }
 0x69c   :  { %v2401_v17 = vsel %vm4612_vm11, %v2398_v24, %v2395_v60  ;;  %v2478_v30 = vadd.f32 %v2374_v8, %v2254_v46  ;;  %3498 = vpow2.f32 %v2316_v16  ;;  %v2297_v48 = vsub.f32 0.0, %v2281_v0 }
 0x69d   :  { %v4637_v14 = vadd.f32 %v2401_v17, %v2257_v28  ;;  %v2383_v23 = vsel %vm4623_vm12, %v2380_v52, %v2377_v2  ;;  %v2294_v28 = vsub.f32 0.0, %v2278_v35  ;;  %v2326_v21 = vmul.f32 1.442695, %v2296_v22 }
 0x69e   :  { %v2479_v51 = vadd.f32 %v2383_v23, %v2255_v11  ;;  %3500 = vlog2.f32 %v2420_v57  ;;  %v2328_v56 = vmul.f32 1.442695, %v2297_v48  ;;  %v2295_v41 = vsub.f32 0.0, %v2279_v26 }
 0x69f   :  { %v3337_v50 = vpack.c.bf16 %v4637_v14, %v4633_v59  ;;  %v4651_v45 = vpop.eup %3494  ;;  %v2322_v25 = vmul.f32 1.442695, %v2294_v28  ;;  %3502 = vpow2.f32 %v2326_v21  ;;  %v2424_v32 = vadd.f32 1.0, %v2423_v9 }
 0x6a0   :  { %v3334_v46 = vpack.c.bf16 %v2479_v51, %v2478_v30  ;;  %v2402_v53 = vadd.f32 1.0, %v4651_v45  ;;  %v2324_v11 = vmul.f32 1.442695, %v2295_v41  ;;  %v2405_v33 = vmul.f32 -0.5, %v4651_v45 }
 0x6a1   :  { %3504 = vpow2.f32 %v2322_v25  ;;  %v2426_v4 = vand.u32 2147483647, %v4596_v63  ;;  %v2260_v12 = vmax.f32 %v4518_v47, 0.0  ;;  %v2425_v8 = vmul.f32 %v4596_v63, %v2424_v32 }
 0x6a2   :  { %3332 = vmatpush3.bf16.xpose.msra.mxu0 %v3331_v15  ;;  %3506 = vlog2.f32 %v2402_v53  ;;  %v2406_v52 = vadd.f32 1.0, %v2405_v33  ;;  %v2261_v10 = vmax.f32 %v4523_v42, 0.0  ;;  %v2408_v13 = vand.u32 2147483647, %v4651_v45 }
 0x6a3   :  { %3333 = vmatprep.subr.bf16.mxu0 %v3554_v61  ;;  %v3497_v39 = vpop.eup %3496  ;;  %3508 = vpow2.f32 %v2328_v56  ;;  %vm4672_vm13 = vcmp.lt.f32.partialorder %v2426_v4, 0.0004427343 }
 0x6a4   :  { %v2429_v5 = vadd.f32 1.0, %v3497_v39  ;;  %v2432_v31 = vmul.f32 -0.5, %v3497_v39  ;;  %v2435_v37 = vand.u32 2147483647, %v3497_v39  ;;  %v2407_v51 = vmul.f32 %v4651_v45, %v2406_v52 }
 0x6a5   :  { %vm4689_vm15 = vcmp.lt.f32.partialorder %v2408_v13, 0.0004427343  ;;  %v2258_v45 = vmax.f32 %v4521_v34, 0.0  ;;  %v2262_v13 = vmax.f32 %v4539_v58, 0.0 }
 0x6a6   :  { %3510 = vlog2.f32 %v2429_v5  ;;  %v3499_v44 = vpop.eup %3498  ;;  %v2433_v40 = vadd.f32 1.0, %v2432_v31  ;;  %vm2436_vm14 = vcmp.lt.f32.partialorder %v2435_v37, 0.0004427343 }
 0x6a7   :  { %3512 = vpow2.f32 %v2324_v11  ;;  %v2411_v7 = vadd.f32 1.0, %v3499_v44  ;;  %v2414_v60 = vmul.f32 -0.5, %v3499_v44  ;;  %v2417_v28 = vand.u32 2147483647, %v3499_v44 }
 0x6a8   :  { %v3501_v19 = vpop.eup %3500  ;;  %v2434_v23 = vmul.f32 %v3497_v39, %v2433_v40  ;;  %v2259_v39 = vmax.f32 %v4525_v43, 0.0 }
 0x6a9   :  { %v4657_v15 = vpop.eup %3502  ;;  %3514 = vlog2.f32 %v2411_v7  ;;  %v2422_v29 = vmul.f32 0.6931472, %v3501_v19  ;;  %v2415_v16 = vadd.f32 1.0, %v2414_v60  ;;  %vm2418_vm2 = vcmp.lt.f32.partialorder %v2417_v28, 0.0004427343 }
 0x6aa   :  { %3335 = vmatpush3.bf16.xpose.msra.mxu0 %v3334_v46  ;;  %v2456_v18 = vadd.f32 1.0, %v4657_v15  ;;  %v2459_v48 = vmul.f32 -0.5, %v4657_v15  ;;  %v2462_v19 = vand.u32 2147483647, %v4657_v15 }
 0x6ab   :  { %3336 = vmatprep.subr.bf16.mxu0 %v3554_v61  ;;  %v4662_v3 = vpop.eup %3504  ;;  %v2428_v47 = vsel %vm4672_vm13, %v2425_v8, %v2422_v29  ;;  %v2416_v41 = vmul.f32 %v3499_v44, %v2415_v16 }
 0x6ac   :  { %v3507_v54 = vpop.eup %3506  ;;  %3516 = vlog2.f32 %v2456_v18  ;;  %v2438_v24 = vadd.f32 1.0, %v4662_v3  ;;  %v2484_v26 = vadd.f32 %v2428_v47, %v2260_v12  ;;  %v2441_v21 = vmul.f32 -0.5, %v4662_v3 }
 0x6ad   :  { %v4665_v1 = vpop.eup %3508  ;;  %v2404_v63 = vmul.f32 0.6931472, %v3507_v54  ;;  %v2460_v11 = vadd.f32 1.0, %v2459_v48  ;;  %v2444_v34 = vand.u32 2147483647, %v4662_v3 }
 0x6ae   :  { %3518 = vlog2.f32 %v2438_v24  ;;  %v2465_v36 = vadd.f32 1.0, %v4665_v1  ;;  %v2468_v25 = vmul.f32 -0.5, %v4665_v1  ;;  %v2442_v4 = vadd.f32 1.0, %v2441_v21 }
 0x6af   :  { %v2471_v44 = vand.u32 2147483647, %v4665_v1  ;;  %v2461_v43 = vmul.f32 %v4657_v15, %v2460_v11  ;;  %v2264_v24 = vmax.f32 %v4532_v55, 0.0  ;;  %vm4705_vm1 = vcmp.lt.f32.partialorder %v2462_v19, 0.0004427343 }
 0x6b0   :  { %v3511_v2 = vpop.eup %3510  ;;  %3520 = vlog2.f32 %v2465_v36  ;;  %v2469_v18 = vadd.f32 1.0, %v2468_v25  ;;  %vm2445_vm7 = vcmp.lt.f32.partialorder %v2444_v34, 0.0004427343  ;;  %v2265_v55 = vmax.f32 %v4552_v38, 0.0  ;;  %v3540_v38 = vld [vmem:[%s4804_s2] sm:$0x1] }
 0x6b1   :  { %v4670_v17 = vpop.f32.mrb[68].mxu0  ;;  %v4678_v30 = vpop.eup %3512  ;;  %v2431_v42 = vmul.f32 0.6931472, %v3511_v2  ;;  %vm2472_vm8 = vcmp.lt.f32.partialorder %v2471_v44, 0.0004427343  ;;  %vm2493_vm5 = vcmp.eq.f32.partialorder %v3540_v38, 1.0 }
 0x6b2   :  { %v3195_v35 = vpop.f32.mrb[69].mxu0  ;;  %3338 = vmatpush3.bf16.xpose.msra.mxu0 %v3337_v50  ;;  %v2447_v0 = vadd.f32 1.0, %v4678_v30  ;;  %v2410_v50 = vsel %vm4689_vm15, %v2407_v51, %v2404_v63  ;;  %v2450_v5 = vmul.f32 -0.5, %v4678_v30  ;;  %v2453_v8 = vand.u32 2147483647, %v4678_v30 }
 0x6b3   :  { %3339 = vmatprep.subr.bf16.mxu0 %v3554_v61  ;;  %v2437_v22 = vsel %vm2436_vm14, %v2434_v23, %v2431_v42  ;;  %v3515_v14 = vpop.eup %3514  ;;  %v2482_v31 = vadd.f32 %v2410_v50, %v2258_v45  ;;  %v2470_v57 = vmul.f32 %v4665_v1, %v2469_v18  ;;  %v2263_v23 = vmax.f32 %v4557_v27, 0.0 }
 0x6b4   :  { %v2485_v59 = vadd.f32 %v2437_v22, %v2261_v10  ;;  %3522 = vlog2.f32 %v2447_v0  ;;  %v2413_v56 = vmul.f32 0.6931472, %v3515_v14  ;;  %v2451_v37 = vadd.f32 1.0, %v2450_v5 }
 0x6b5   :  { %v2443_v10 = vmul.f32 %v4662_v3, %v2442_v4  ;;  %vm2454_vm4 = vcmp.lt.f32.partialorder %v2453_v8, 0.0004427343  ;;  %vm2490_vm6 = vcmp.eq.f32.partialorder %v3540_v38, 0.0 }
 0x6b6   :  { %v3343_v53 = vpack.c.bf16 %v2485_v59, %v2484_v26  ;;  %v3517_v9 = vpop.eup %3516  ;;  %v2419_v7 = vsel %vm2418_vm2, %v2416_v41, %v2413_v56  ;;  %v2452_v63 = vmul.f32 %v4678_v30, %v2451_v37  ;;  %v2777_v30 = vsel %vm2493_vm5, 1.0, %v3555_v62 }
 0x6b7   :  { %v2483_v32 = vadd.f32 %v2419_v7, %v2259_v39  ;;  %v2458_v33 = vmul.f32 0.6931472, %v3517_v9  ;;  %v2500_v27 = vrot.slane %v2777_v30, %v846_v6  ;;  %v2776_v22 = vsel %vm2490_vm6, 1.0, %v3555_v62 }
 0x6b8   :  { %v3519_v29 = vpop.eup %3518 }
 0x6b9   :  { %v3340_v40 = vpack.c.bf16 %v2483_v32, %v2482_v31  ;;  %v2440_v54 = vmul.f32 0.6931472, %v3519_v29  ;;  %v2464_v52 = vsel %vm4705_vm1, %v2461_v43, %v2458_v33  ;;  %v2502_v28 = vsel %vm215_vm0, %v2776_v22, %v2500_v27 }
 0x6ba   :  { %v3521_v60 = vpop.eup %3520  ;;  %v2488_v42 = vadd.f32 %v2464_v52, %v2264_v24 }
 0x6bb   :  { %v2467_v2 = vmul.f32 0.6931472, %v3521_v60  ;;  %3341 = vmatpush3.bf16.xpose.msra.mxu0 %v3340_v40  ;;  %v2446_v36 = vsel %vm2445_vm7, %v2443_v10, %v2440_v54 }
 0x6bc   :  { %3342 = vmatprep.subr.bf16.mxu0 %v3554_v61  ;;  %v2486_v16 = vadd.f32 %v2446_v36, %v2262_v13 }
 0x6bd   :  { %v2473_v35 = vsel %vm2472_vm8, %v2470_v57, %v2467_v2 }
 0x6be   :  { %v3523_v15 = vpop.eup %3522  ;;  %v2489_v3 = vadd.f32 %v2473_v35, %v2265_v55 }
 0x6bf   :  { %v2449_v47 = vmul.f32 0.6931472, %v3523_v15 }
 0x6c0   :  { %v3349_v0 = vpack.c.bf16 %v2489_v3, %v2488_v42 }
 0x6c1   :  { %v2455_v1 = vsel %vm2454_vm4, %v2452_v63, %v2449_v47 }
 0x6c2   :  { %v2487_v58 = vadd.f32 %v2455_v1, %v2263_v23 }
 0x6c3   :  { %3344 = vmatpush3.bf16.xpose.msra.mxu0 %v3343_v53 }
 0x6c4   :  { %v3346_v51 = vpack.c.bf16 %v2487_v58, %v2486_v16  ;;  %3345 = vmatprep.subr.bf16.mxu0 %v3554_v61 }
 0x6cb   :  { %3347 = vmatpush3.bf16.xpose.msra.mxu0 %v3346_v51 }
 0x6cc   :  { %3348 = vmatprep.subr.bf16.mxu0 %v3554_v61 }
 0x6d3   :  { %3350 = vmatpush3.bf16.xpose.msra.mxu0 %v3349_v0 }
 0x6da   :  { %3261 = vmatmul.mubr.f32.vlgmr.msra.gmra.mrb[70].mxu0 %v2502_v28 }
 0x6db   :  { %3550 = shalt.err (!%p3547_p2)
}
 0x6dc   :  { %s3558_s12 = smov [#allocation3]   ;;  %v2075_v61 = vand.u32 2147483647, %v4670_v17  ;;  %v3559_v14 = vmov 1966171168   ;;  %v2074_v41 = vmax.f32 %v4670_v17, 0.0 }
 0x6dd   :  { %2611 = dma.smem_to_hbm %s3558_s12, 16, %s4775_s25, [#allocation4]   ;;  %v2575_v50 = vunpack.c.l.s4 %v3559_v14  ;;  %v1196_v17 = vmul.f32 0.5, %v4150_v20 }
 0x6de   :  { %v2076_v62 = vsub.f32 0.0, %v2075_v61 }
 0x6df   :  { %v2576_v56 = vunpack.c.0.s8 %v2575_v50 }
 0x6e0   :  { %v2077_v6 = vmul.f32 1.442695, %v2076_v62 }
 0x6e1   :  { %v2579_v11 = vsub.s32 %v2576_v56, %v4263_v49 }
 0x6e2   :  { %3524 = vpow2.f32 %v2077_v6 }
 0x6ec   :  { %v3525_v48 = vpop.eup %3524 }
 0x6ed   :  { %v2079_v26 = vadd.f32 1.0, %v3525_v48  ;;  %v2082_v46 = vmul.f32 -0.5, %v3525_v48  ;;  %v2085_v25 = vand.u32 2147483647, %v3525_v48 }
 0x6ef   :  { %3526 = vlog2.f32 %v2079_v26  ;;  %v2083_v59 = vadd.f32 1.0, %v2082_v46  ;;  %vm2086_vm0 = vcmp.lt.f32.partialorder %v2085_v25, 0.0004427343 }
 0x6f1   :  { %v2084_v53 = vmul.f32 %v3525_v48, %v2083_v59 }
 0x6f9   :  { %v3527_v21 = vpop.eup %3526 }
 0x6fa   :  { %v2081_v45 = vmul.f32 0.6931472, %v3527_v21 }
 0x6fc   :  { %v2087_v39 = vsel %vm2086_vm0, %v2084_v53, %v2081_v45 }
 0x6fd   :  { %v2088_v5 = vadd.f32 %v2087_v39, %v2074_v41 }
 0x6ff   :  { %v2591_v32 = vadd.f32 1e-16, %v2088_v5 }
 0x701   :  { %3528 = vlog2.f32 %v2591_v32 }
 0x70b   :  { %v3529_v29 = vpop.eup %3528 }
 0x70c   :  { %v2593_v44 = vmul.f32 0.6931472, %v3529_v29 }
 0x7ad   :  { %v2569_v9 = vpop.f32.mrb[70].mxu0 }
 0x7ae   :  { %v2580_v31 = vrot.slane %v2569_v9, %v2579_v11  ;;  %v3262_v7 = vpop.f32.mrb[71].mxu0 }
 0x7b0   :  { %v2581_v19 = vcombine.high %v2580_v31, %v2580_v31 }
 0x7b2   :  { %v2588_v33 = vrot.slane %v2581_v19, %v2579_v11 }
 0x7b4   :  { %v2590_v4 = vsel %vm2490_vm6, %v2569_v9, %v2588_v33 }
 0x7b5   :  { %v2594_v18 = vadd.f32 1e-16, %v2590_v4 }
 0x7b7   :  { %3530 = vlog2.f32 %v2594_v18 }
 0x7c1   :  { %v3531_v34 = vpop.eup %3530 }
 0x7c2   :  { %v2596_v40 = vmul.f32 0.6931472, %v3531_v34 }
 0x7c4   :  { %v2597_v43 = vsub.f32 %v2593_v44, %v2596_v40 }
 0x7c6   :  { %v2598_v49 = vsub.f32 %v1196_v17, %v2597_v43 }
 0x7c8   :  { %2599 = vst [vmem:[%s4774_s24] sm:$0x1] %v2598_v49 }
 0x7c9   :  { %3551 = dma.done.wait [#allocation4], 16  }
 0x7ca   :  { %3552 = vsyncadd [#allocation4], 4294967280 }
 0x7cb   :  { %2619 = sfence }
 0x7cc   :  { %2620 = vsyncpa [#allocation4], 1 }

</bundles_post_ra>
